<compile_context>
chip_gen: v7x
topology: tpu7x:2x2x1
jax: 0.10.0
libtpu: 0.0.40
codegen_flags: <defaults>
</compile_context>

<pallas_src>
import functools
import numpy as np
import jax
import jax.numpy as jnp
from jax.experimental import pallas as pl
from jax.experimental.pallas import tpu as pltpu


_VMEM = pl.BlockSpec(memory_space=pltpu.MemorySpace.VMEM)


def _sigmoid(x):
    # single-EUP logistic: sigmoid(x) = 0.5 * (tanh(x/2) + 1)
    return 0.5 * (jnp.tanh(0.5 * x) + 1.0)


# ----------------------------- Pallas kernels ------------------------------

def bilstm_towers_kernel(x_ref, wihT_ref, whhT_ref, bias_ref, h0_ref, c0_ref,
                         o_ref, gx_ref, *, T, B, H):
    """One bidirectional LSTM layer for one tower (grid iterates over towers).

    x_ref:    (1, T*B, Din)   time-major 2D input, row = t*B + b
    wihT_ref: (1, Din, 8H)    [Wih_f^T | Wih_b^T]
    whhT_ref: (1, H,  8H)     [Whh_f^T | Whh_b^T]
    bias_ref: (1, 2B, 4H)     rows 0:B = bih_f+bhh_f, rows B:2B = bih_b+bhh_b
    h0_ref / c0_ref: (1, 2B, H)  rows 0:B forward init, rows B:2B backward init
    o_ref:    (1, 2, T, B, H)    dir-major output (fwd at [0], bwd at [1])
    gx_ref:   (T, B, 8H) scratch -- hoisted input projection
    """
    G = 4 * H

    # Hoisted input projection: one well-shaped matmul for both directions and
    # all time steps, off the serial recurrence chain.
    gx2d = jnp.dot(x_ref[0], wihT_ref[0], preferred_element_type=jnp.float32)
    for t in range(T):                                   # static scatter
        gx_ref[t] = gx2d[t * B:(t + 1) * B, :]

    whhT = whhT_ref[0]                                   # (H, 8H)
    bias = bias_ref[0]                                   # (2B, 4H)

    def step(s, carry):
        h, c = carry                                     # (2B, H) each
        tb = T - 1 - s
        # One fused recurrent matmul for forward + backward direction.
        gh = jnp.dot(h, whhT, preferred_element_type=jnp.float32)   # (2B, 8H)
        gx = jnp.concatenate([gx_ref[s], gx_ref[tb]], axis=0)       # (2B, 8H)
        gsum = gh + gx
        # forward gates live in rows 0:B, lanes 0:4H; backward in rows B:2B,
        # lanes 4H:8H (lane-aligned slices).
        gates = jnp.concatenate([gsum[:B, :G], gsum[B:, G:]], axis=0) + bias
        i = _sigmoid(gates[:, 0:H])
        f = _sigmoid(gates[:, H:2 * H])
        g = jnp.tanh(gates[:, 2 * H:3 * H])
        o = _sigmoid(gates[:, 3 * H:4 * H])
        c_new = f * c + i * g
        h_new = o * jnp.tanh(c_new)
        o_ref[0, 0, s] = h_new[:B]                       # forward h_t
        o_ref[0, 1, tb] = h_new[B:]                      # backward h_t
        return (h_new, c_new)

    jax.lax.fori_loop(0, T, step, (h0_ref[0], c0_ref[0]))


def epilogue_kernel(o_ref, lw_ref, lb_ref, w1_ref, b1_ref, w2_ref, b2_ref,
                    out0_ref, ind_ref, out3_ref, out4_ref,
                    xpad_ref, hpad_ref, *, T, B, H):
    """Fused epilogue: two Linear heads, Conv1d(k7)+ReLU, Conv1d(k3), gate.

    o_ref:  (3, 2, T, B, H)  LSTM tower outputs (tower 0 -> out0 head,
                             tower 1 -> out3 head, tower 2 -> indicator CNN)
    lw_ref: (2, 2H)  lb_ref: (1, 2)
    w1_ref: (7*2H, H)  b1_ref: (1, H)     (im2col-reshaped conv weights)
    w2_ref: (3*H, 1)   b2_ref: (1, 1)
    outputs: out0/Ind/out3/out4 each (B, T, 1)
    scratch: xpad_ref (B, T+6, 2H), hpad_ref (B, T+2, H)
    """
    C = 2 * H

    # ---- Linear heads while o is resident in VMEM ----
    def lin_head(tower, row):
        wf = lw_ref[row:row + 1, 0:H]                    # (1, H)
        wb = lw_ref[row:row + 1, H:C]                    # (1, H)
        r = (jnp.sum(o_ref[tower, 0] * wf, axis=-1) +
             jnp.sum(o_ref[tower, 1] * wb, axis=-1))     # (T, B)
        return r + lb_ref[0:1, row:row + 1]

    out0_tb = lin_head(0, 0)                             # (T, B)
    out3_tb = lin_head(1, 1)                             # (T, B)

    # ---- repack indicator-tower output to batch-major, zero-padded time ----
    xpad_ref[...] = jnp.zeros_like(xpad_ref)
    hpad_ref[...] = jnp.zeros_like(hpad_ref)
    for t in range(T):
        row = jnp.concatenate([o_ref[2, 0, t], o_ref[2, 1, t]], axis=-1)  # (B, 2H)
        for b in range(B):
            xpad_ref[b, 3 + t:4 + t, :] = row[b:b + 1, :]

    # ---- conv(k7,p3)+ReLU -> conv(k3,p1) -> sigmoid gate, per batch row ----
    for b in range(B):
        cols = jnp.concatenate([xpad_ref[b, k:k + T, :] for k in range(7)],
                               axis=-1)                  # (T, 7*2H) im2col
        h1 = jnp.dot(cols, w1_ref[...], preferred_element_type=jnp.float32)
        h1 = jnp.maximum(h1 + b1_ref[...], 0.0)          # (T, H)
        hpad_ref[b, 1:1 + T, :] = h1
        cols2 = jnp.concatenate([hpad_ref[b, k:k + T, :] for k in range(3)],
                                axis=-1)                 # (T, 3H)
        ind_b = jnp.dot(cols2, w2_ref[...],
                        preferred_element_type=jnp.float32) + b2_ref[...]  # (T,1)
        ind_ref[b] = ind_b

        s = _sigmoid(ind_b * 4.0)
        aa = jnp.round(s)                                # 0/1 far-point mask
        o0 = out0_tb[:, b:b + 1]                         # (T, 1)
        o3 = out3_tb[:, b:b + 1]
        out0_ref[b] = o0
        out3_ref[b] = o3
        out4_ref[b] = s * aa * o0 + (1.0 - aa) * o3      # detach() is a no-op


# ----------------------------- wrappers (glue) ------------------------------

def _prep_lstm_tower(layer_p, B, pad_in_to):
    """Prepare stacked/transposed per-tower LSTM weights for one layer."""
    wih, whh = layer_p['wih'], layer_p['whh']            # (2,4H,Din), (2,4H,H)
    if wih.shape[-1] < pad_in_to:                        # lstm02 (Din=1) case
        wih = jnp.pad(wih, ((0, 0), (0, 0), (0, pad_in_to - wih.shape[-1])))
    wihT = jnp.concatenate([wih[0].T, wih[1].T], axis=1)     # (Din, 8H)
    whhT = jnp.concatenate([whh[0].T, whh[1].T], axis=1)     # (H, 8H)
    bias = layer_p['bih'] + layer_p['bhh']                   # (2, 4H)
    bmat = jnp.concatenate([jnp.broadcast_to(bias[0], (B, bias.shape[1])),
                            jnp.broadcast_to(bias[1], (B, bias.shape[1]))],
                           axis=0)                           # (2B, 4H)
    return wihT, whhT, bmat


def _bilstm_towers(x_stk, wihT_stk, whhT_stk, bias_stk, h0_stk, c0_stk,
                   T, B, H):
    NT = x_stk.shape[0]
    Din = x_stk.shape[-1]
    G8 = 8 * H
    return pl.pallas_call(
        functools.partial(bilstm_towers_kernel, T=T, B=B, H=H),
        out_shape=jax.ShapeDtypeStruct((NT, 2, T, B, H), jnp.float32),
        grid=(NT,),
        in_specs=[
            pl.BlockSpec((1, T * B, Din), lambda t: (t, 0, 0)),
            pl.BlockSpec((1, Din, G8), lambda t: (t, 0, 0)),
            pl.BlockSpec((1, H, G8), lambda t: (t, 0, 0)),
            pl.BlockSpec((1, 2 * B, 4 * H), lambda t: (t, 0, 0)),
            pl.BlockSpec((1, 2 * B, H), lambda t: (t, 0, 0)),
            pl.BlockSpec((1, 2 * B, H), lambda t: (t, 0, 0)),
        ],
        out_specs=pl.BlockSpec((1, 2, T, B, H), lambda t: (t, 0, 0, 0, 0)),
        scratch_shapes=[pltpu.VMEM((T, B, G8), jnp.float32)],
        compiler_params=pltpu.CompilerParams(
            dimension_semantics=("parallel",)),
    )(x_stk, wihT_stk, whhT_stk, bias_stk, h0_stk, c0_stk)


def _epilogue(o_stk, lw, lb, w1, b1, w2, b2, T, B, H):
    return pl.pallas_call(
        functools.partial(epilogue_kernel, T=T, B=B, H=H),
        out_shape=(jax.ShapeDtypeStruct((B, T, 1), jnp.float32),) * 4,
        in_specs=[_VMEM] * 7,
        out_specs=(_VMEM,) * 4,
        scratch_shapes=[pltpu.VMEM((B, T + 6, 2 * H), jnp.float32),
                        pltpu.VMEM((B, T + 2, H), jnp.float32)],
    )(o_stk, lw, lb, w1, b1, w2, b2)


def decoder_lstm_forward(params, x1, x2, x3, encoder_h, encoder_c, *,
                         r_shift, hidden_dim, layer_dim):
    B, T, _ = x1.shape
    H = hidden_dim
    L = layer_dim

    def to_tm2d(x):                       # (B, T, C) -> time-major (T*B, C)
        return jnp.transpose(x, (1, 0, 2)).reshape(T * B, x.shape[-1])

    def hc_cat(hc):                       # (2L, B, H) -> (L, 2B, H)
        return jnp.stack([jnp.concatenate([hc[2 * l], hc[2 * l + 1]], axis=0)
                          for l in range(L)], axis=0)

    x1_tm = to_tm2d(x1)
    if r_shift > 0:
        towers = [params['lstm00'], params['lstm03'], params['lstm01']]
        xt2_tm = x1_tm
        h_t2, c_t2 = hc_cat(encoder_h[1]), hc_cat(encoder_c[1])
    else:
        towers = [params['lstm00'], params['lstm03'], params['lstm02']]
        x2p = jnp.pad(x2, ((0, 0), (0, 0), (0, 2 - x2.shape[-1])))
        xt2_tm = to_tm2d(x2p)
        h_t2 = jnp.zeros((L, 2 * B, H), jnp.float32)
        c_t2 = h_t2

    h_stk = jnp.stack([hc_cat(encoder_h[0]), hc_cat(encoder_h[2]), h_t2], 0)
    c_stk = jnp.stack([hc_cat(encoder_c[0]), hc_cat(encoder_c[2]), c_t2], 0)
    x_cur = jnp.stack([x1_tm, x1_tm, xt2_tm], axis=0)    # (3, T*B, 2)

    o = None
    for l in range(L):
        wihT_l, whhT_l, bias_l = [], [], []
        for tw in towers:
            wihT, whhT, bmat = _prep_lstm_tower(tw[l], B, x_cur.shape[-1])
            wihT_l.append(wihT)
            whhT_l.append(whhT)
            bias_l.append(bmat)
        o = _bilstm_towers(x_cur, jnp.stack(wihT_l), jnp.stack(whhT_l),
                           jnp.stack(bias_l), h_stk[:, l], c_stk[:, l],
                           T, B, H)
        if l + 1 < L:
            # relayout (tower, dir, t, b, h) -> (tower, t*B+b, 2H) next input
            x_cur = jnp.transpose(o, (0, 2, 3, 1, 4)).reshape(3, T * B, 2 * H)

    # epilogue parameter prep (im2col-compatible conv weights)
    lw = jnp.concatenate([params['L_out00_w'], params['L_out03_w']], axis=0)
    lb = jnp.stack([params['L_out00_b'][0], params['L_out03_b'][0]]).reshape(1, 2)
    K1, Ci1, Co1 = params['cnn00_w'].shape
    w1 = params['cnn00_w'].reshape(K1 * Ci1, Co1)
    b1 = params['cnn00_b'].reshape(1, Co1)
    K2, Ci2, Co2 = params['cnn01_w'].shape
    w2 = params['cnn01_w'].reshape(K2 * Ci2, Co2)
    b2 = params['cnn01_b'].reshape(1, Co2)

    out0_3, ind, out3_3, out4_3 = _epilogue(o, lw, lb, w1, b1, w2, b2, T, B, H)
    return out0_3[..., 0], ind, out3_3[..., 0], out4_3[..., 0]


# ----------------------------- init & reference -----------------------------

def init_params(key, hidden_dim, layer_dim):
    H = hidden_dim
    keys = iter(jax.random.split(key, 64))

    def u(shape, scale):
        return jax.random.uniform(next(keys), shape, jnp.float32, -scale, scale)

    def lstm_params(din):
        layers = []
        s = 1.0 / np.sqrt(H)
        d = din
        for _ in range(layer_dim):
            layers.append(dict(wih=u((2, 4 * H, d), s),
                               whh=u((2, 4 * H, H), s),
                               bih=u((2, 4 * H), s),
                               bhh=u((2, 4 * H), s)))
            d = 2 * H
        return layers

    sl = 1.0 / np.sqrt(2 * H)
    s0 = 1.0 / np.sqrt(2 * H * 7)
    s1 = 1.0 / np.sqrt(H * 3)
    return dict(
        lstm00=lstm_params(2), lstm01=lstm_params(2),
        lstm02=lstm_params(1), lstm03=lstm_params(2),
        L_out00_w=u((1, 2 * H), sl), L_out00_b=u((1,), sl),
        L_out03_w=u((1, 2 * H), sl), L_out03_b=u((1,), sl),
        cnn00_w=u((7, 2 * H, H), s0), cnn00_b=u((H,), s0),   # (K, Cin, Cout)
        cnn01_w=u((3, H, 1), s1),     cnn01_b=u((1,), s1),
    )


def ref_forward(params, x1, x2, x3, encoder_h, encoder_c, r_shift, H, L):
    P = jax.tree_util.tree_map(np.asarray, params)
    x1n, x2n = np.asarray(x1), np.asarray(x2)
    eh = [np.asarray(h) for h in encoder_h]
    ec = [np.asarray(c) for c in encoder_c]

    def sig(z):
        return 1.0 / (1.0 + np.exp(-z))

    def bilstm(x, layers, h0, c0):
        out = x
        for l, p in enumerate(layers):
            Hh = p['whh'].shape[-1]
            B, T, _ = out.shape
            dirs = []
            for d in range(2):
                h, c = h0[2 * l + d].copy(), c0[2 * l + d].copy()
                wih, whh = p['wih'][d], p['whh'][d]
                bias = p['bih'][d] + p['bhh'][d]
                order = range(T) if d == 0 else range(T - 1, -1, -1)
                ys = [None] * T
                for t in order:
                    g = out[:, t, :] @ wih.T + h @ whh.T + bias
                    i = sig(g[:, :Hh]); f = sig(g[:, Hh:2 * Hh])
                    gg = np.tanh(g[:, 2 * Hh:3 * Hh]); o = sig(g[:, 3 * Hh:])
                    c = f * c + i * gg
                    h = o * np.tanh(c)
                    ys[t] = h
                dirs.append(np.stack(ys, axis=1))
            out = np.concatenate(dirs, axis=-1)
        return out

    def conv(x, w, b, pad):
        B, T, _ = x.shape
        K, _, Cout = w.shape
        xp = np.pad(x, ((0, 0), (pad, pad), (0, 0)))
        y = np.zeros((B, T, Cout), np.float64)
        for k in range(K):
            y = y + xp[:, k:k + T, :] @ w[k]
        return y + b[None, None, :]

    o0 = bilstm(x1n, P['lstm00'], eh[0], ec[0])
    out0 = (o0 @ P['L_out00_w'].T)[..., 0] + P['L_out00_b'][0]
    o3 = bilstm(x1n, P['lstm03'], eh[2], ec[2])
    out3 = (o3 @ P['L_out03_w'].T)[..., 0] + P['L_out03_b'][0]
    if r_shift > 0:
        o1 = bilstm(x1n, P['lstm01'], eh[1], ec[1])
    else:
        z = np.zeros((L * 2, x2n.shape[0], H), np.float32)
        o1 = bilstm(x2n, P['lstm02'], z, z)
    hid = np.maximum(conv(o1, P['cnn00_w'], P['cnn00_b'], 3), 0.0)
    Ind = conv(hid, P['cnn01_w'], P['cnn01_b'], 1)
    s = sig(Ind[..., 0] * 4.0)
    aa = np.round(s)
    out4 = (s * aa) * out0 + (1.0 - aa) * out3
    return out0, Ind, out3, out4


# ----------------------------------- main -----------------------------------

if __name__ == "__main__":
    B, T, H, L = 2, 8, 32, 1      # batch, seq, hidden_dim, layer_dim

    key = jax.random.PRNGKey(0)
    kp, kx1, kx2, kx3, kh, kc = jax.random.split(key, 6)
    params = init_params(kp, H, L)

    x1 = jax.random.normal(kx1, (B, T, 2), jnp.float32)
    x2 = jax.random.normal(kx2, (B, T, 1), jnp.float32)
    x3 = jax.random.normal(kx3, (B, T, 2), jnp.float32)   # unused by forward
    encoder_h = [jax.random.normal(jax.random.fold_in(kh, i), (2 * L, B, H),
                                   jnp.float32) for i in range(3)]
    encoder_c = [jax.random.normal(jax.random.fold_in(kc, i), (2 * L, B, H),
                                   jnp.float32) for i in range(3)]

    fwd = jax.jit(decoder_lstm_forward,
                  static_argnames=("r_shift", "hidden_dim", "layer_dim"))

    ok = True
    for r_shift in (1, 0):
        out0, Ind, out3, out4 = fwd(params, x1, x2, x3, encoder_h, encoder_c,
                                    r_shift=r_shift, hidden_dim=H, layer_dim=L)
        jax.block_until_ready((out0, Ind, out3, out4))
        r0, rInd, r3, r4 = ref_forward(params, x1, x2, x3, encoder_h,
                                       encoder_c, r_shift, H, L)
        ok &= np.allclose(np.asarray(out0), r0, atol=1e-4, rtol=1e-4)
        ok &= np.allclose(np.asarray(Ind), rInd, atol=1e-4, rtol=1e-4)
        ok &= np.allclose(np.asarray(out3), r3, atol=1e-4, rtol=1e-4)
        ok &= np.allclose(np.asarray(out4), r4, atol=1e-4, rtol=1e-4)

    assert ok
    print("KERNEL_OK")
</pallas_src>

<mosaic_0001>
module attributes {stable_mosaic.version = 11 : i64} {
  func.func @bilstm_towers_kernel(%arg0: i32, %arg1: memref<1x16x2xf32, #tpu.memory_space<vmem>>, %arg2: memref<1x2x256xf32, #tpu.memory_space<vmem>>, %arg3: memref<1x32x256xf32, #tpu.memory_space<vmem>>, %arg4: memref<1x4x128xf32, #tpu.memory_space<vmem>>, %arg5: memref<1x4x32xf32, #tpu.memory_space<vmem>>, %arg6: memref<1x4x32xf32, #tpu.memory_space<vmem>>, %arg7: memref<1x2x8x2x32xf32, #tpu.memory_space<vmem>>, %arg8: memref<8x2x256xf32, #tpu.memory_space<vmem>>) attributes {dimension_semantics = [#tpu.dimension_semantics<parallel>], iteration_bounds = array<i64: 3>, scalar_prefetch = 0 : i64, scratch_operands = 1 : i64, tpu.core_type = #tpu.core_type<tc>, window_params = [{transform_indices = @transform_0, window_bounds = array<i64: 1, 16, 2>}, {transform_indices = @transform_1, window_bounds = array<i64: 1, 2, 256>}, {transform_indices = @transform_2, window_bounds = array<i64: 1, 32, 256>}, {transform_indices = @transform_3, window_bounds = array<i64: 1, 4, 128>}, {transform_indices = @transform_4, window_bounds = array<i64: 1, 4, 32>}, {transform_indices = @transform_5, window_bounds = array<i64: 1, 4, 32>}, {transform_indices = @transform_6, window_bounds = array<i64: 1, 2, 8, 2, 32>}]} {
    %c0 = arith.constant 0 : index
    %c0_0 = arith.constant 0 : index
    %c0_1 = arith.constant 0 : index
    %0 = vector.load %arg1[%c0, %c0_0, %c0_1] : memref<1x16x2xf32, #tpu.memory_space<vmem>>, vector<1x16x2xf32>
    %1 = vector.shape_cast %0 : vector<1x16x2xf32> to vector<16x2xf32>
    %c0_2 = arith.constant 0 : index
    %c0_3 = arith.constant 0 : index
    %c0_4 = arith.constant 0 : index
    %2 = vector.load %arg2[%c0_2, %c0_3, %c0_4] : memref<1x2x256xf32, #tpu.memory_space<vmem>>, vector<1x2x256xf32>
    %3 = vector.shape_cast %2 : vector<1x2x256xf32> to vector<2x256xf32>
    %cst = arith.constant dense<0.000000e+00> : vector<16x256xf32>
    %4 = tpu.matmul %1, %3, %cst {dimension_numbers = #tpu.dot_dimension_numbers<[1], [0], [0], [1], [0, 0, 1, 1], [], []>} : vector<16x2xf32>, vector<2x256xf32>, vector<16x256xf32> -> vector<16x256xf32>
    %5 = vector.extract_strided_slice %4 {offsets = [0, 0], sizes = [2, 256], strides = [1, 1]} : vector<16x256xf32> to vector<2x256xf32>
    %c0_5 = arith.constant 0 : index
    %c0_6 = arith.constant 0 : index
    %c0_7 = arith.constant 0 : index
    %6 = vector.load %arg8[%c0_5, %c0_6, %c0_7] : memref<8x2x256xf32, #tpu.memory_space<vmem>>, vector<1x2x256xf32>
    %7 = vector.shape_cast %6 : vector<1x2x256xf32> to vector<2x256xf32>
    %8 = vector.shape_cast %5 : vector<2x256xf32> to vector<1x2x256xf32>
    tpu.vector_store %arg8[%c0_5, %c0_6, %c0_7], %8 {strides = array<i32>} : memref<8x2x256xf32, #tpu.memory_space<vmem>>, vector<1x2x256xf32>,
    %9 = vector.extract_strided_slice %4 {offsets = [2, 0], sizes = [2, 256], strides = [1, 1]} : vector<16x256xf32> to vector<2x256xf32>
    %c1 = arith.constant 1 : index
    %c0_8 = arith.constant 0 : index
    %c0_9 = arith.constant 0 : index
    %10 = vector.load %arg8[%c1, %c0_8, %c0_9] : memref<8x2x256xf32, #tpu.memory_space<vmem>>, vector<1x2x256xf32>
    %11 = vector.shape_cast %10 : vector<1x2x256xf32> to vector<2x256xf32>
    %12 = vector.shape_cast %9 : vector<2x256xf32> to vector<1x2x256xf32>
    tpu.vector_store %arg8[%c1, %c0_8, %c0_9], %12 {strides = array<i32>} : memref<8x2x256xf32, #tpu.memory_space<vmem>>, vector<1x2x256xf32>,
    %13 = vector.extract_strided_slice %4 {offsets = [4, 0], sizes = [2, 256], strides = [1, 1]} : vector<16x256xf32> to vector<2x256xf32>
    %c2 = arith.constant 2 : index
    %c0_10 = arith.constant 0 : index
    %c0_11 = arith.constant 0 : index
    %14 = vector.load %arg8[%c2, %c0_10, %c0_11] : memref<8x2x256xf32, #tpu.memory_space<vmem>>, vector<1x2x256xf32>
    %15 = vector.shape_cast %14 : vector<1x2x256xf32> to vector<2x256xf32>
    %16 = vector.shape_cast %13 : vector<2x256xf32> to vector<1x2x256xf32>
    tpu.vector_store %arg8[%c2, %c0_10, %c0_11], %16 {strides = array<i32>} : memref<8x2x256xf32, #tpu.memory_space<vmem>>, vector<1x2x256xf32>,
    %17 = vector.extract_strided_slice %4 {offsets = [6, 0], sizes = [2, 256], strides = [1, 1]} : vector<16x256xf32> to vector<2x256xf32>
    %c3 = arith.constant 3 : index
    %c0_12 = arith.constant 0 : index
    %c0_13 = arith.constant 0 : index
    %18 = vector.load %arg8[%c3, %c0_12, %c0_13] : memref<8x2x256xf32, #tpu.memory_space<vmem>>, vector<1x2x256xf32>
    %19 = vector.shape_cast %18 : vector<1x2x256xf32> to vector<2x256xf32>
    %20 = vector.shape_cast %17 : vector<2x256xf32> to vector<1x2x256xf32>
    tpu.vector_store %arg8[%c3, %c0_12, %c0_13], %20 {strides = array<i32>} : memref<8x2x256xf32, #tpu.memory_space<vmem>>, vector<1x2x256xf32>,
    %21 = vector.extract_strided_slice %4 {offsets = [8, 0], sizes = [2, 256], strides = [1, 1]} : vector<16x256xf32> to vector<2x256xf32>
    %c4 = arith.constant 4 : index
    %c0_14 = arith.constant 0 : index
    %c0_15 = arith.constant 0 : index
    %22 = vector.load %arg8[%c4, %c0_14, %c0_15] : memref<8x2x256xf32, #tpu.memory_space<vmem>>, vector<1x2x256xf32>
    %23 = vector.shape_cast %22 : vector<1x2x256xf32> to vector<2x256xf32>
    %24 = vector.shape_cast %21 : vector<2x256xf32> to vector<1x2x256xf32>
    tpu.vector_store %arg8[%c4, %c0_14, %c0_15], %24 {strides = array<i32>} : memref<8x2x256xf32, #tpu.memory_space<vmem>>, vector<1x2x256xf32>,
    %25 = vector.extract_strided_slice %4 {offsets = [10, 0], sizes = [2, 256], strides = [1, 1]} : vector<16x256xf32> to vector<2x256xf32>
    %c5 = arith.constant 5 : index
    %c0_16 = arith.constant 0 : index
    %c0_17 = arith.constant 0 : index
    %26 = vector.load %arg8[%c5, %c0_16, %c0_17] : memref<8x2x256xf32, #tpu.memory_space<vmem>>, vector<1x2x256xf32>
    %27 = vector.shape_cast %26 : vector<1x2x256xf32> to vector<2x256xf32>
    %28 = vector.shape_cast %25 : vector<2x256xf32> to vector<1x2x256xf32>
    tpu.vector_store %arg8[%c5, %c0_16, %c0_17], %28 {strides = array<i32>} : memref<8x2x256xf32, #tpu.memory_space<vmem>>, vector<1x2x256xf32>,
    %29 = vector.extract_strided_slice %4 {offsets = [12, 0], sizes = [2, 256], strides = [1, 1]} : vector<16x256xf32> to vector<2x256xf32>
    %c6 = arith.constant 6 : index
    %c0_18 = arith.constant 0 : index
    %c0_19 = arith.constant 0 : index
    %30 = vector.load %arg8[%c6, %c0_18, %c0_19] : memref<8x2x256xf32, #tpu.memory_space<vmem>>, vector<1x2x256xf32>
    %31 = vector.shape_cast %30 : vector<1x2x256xf32> to vector<2x256xf32>
    %32 = vector.shape_cast %29 : vector<2x256xf32> to vector<1x2x256xf32>
    tpu.vector_store %arg8[%c6, %c0_18, %c0_19], %32 {strides = array<i32>} : memref<8x2x256xf32, #tpu.memory_space<vmem>>, vector<1x2x256xf32>,
    %33 = vector.extract_strided_slice %4 {offsets = [14, 0], sizes = [2, 256], strides = [1, 1]} : vector<16x256xf32> to vector<2x256xf32>
    %c7 = arith.constant 7 : index
    %c0_20 = arith.constant 0 : index
    %c0_21 = arith.constant 0 : index
    %34 = vector.load %arg8[%c7, %c0_20, %c0_21] : memref<8x2x256xf32, #tpu.memory_space<vmem>>, vector<1x2x256xf32>
    %35 = vector.shape_cast %34 : vector<1x2x256xf32> to vector<2x256xf32>
    %36 = vector.shape_cast %33 : vector<2x256xf32> to vector<1x2x256xf32>
    tpu.vector_store %arg8[%c7, %c0_20, %c0_21], %36 {strides = array<i32>} : memref<8x2x256xf32, #tpu.memory_space<vmem>>, vector<1x2x256xf32>,
    %c0_22 = arith.constant 0 : index
    %c0_23 = arith.constant 0 : index
    %c0_24 = arith.constant 0 : index
    %37 = vector.load %arg3[%c0_22, %c0_23, %c0_24] : memref<1x32x256xf32, #tpu.memory_space<vmem>>, vector<1x32x256xf32>
    %38 = vector.shape_cast %37 : vector<1x32x256xf32> to vector<32x256xf32>
    %c0_25 = arith.constant 0 : index
    %c0_26 = arith.constant 0 : index
    %c0_27 = arith.constant 0 : index
    %39 = vector.load %arg4[%c0_25, %c0_26, %c0_27] : memref<1x4x128xf32, #tpu.memory_space<vmem>>, vector<1x4x128xf32>
    %40 = vector.shape_cast %39 : vector<1x4x128xf32> to vector<4x128xf32>
    %c0_28 = arith.constant 0 : index
    %c0_29 = arith.constant 0 : index
    %c0_30 = arith.constant 0 : index
    %41 = vector.load %arg5[%c0_28, %c0_29, %c0_30] : memref<1x4x32xf32, #tpu.memory_space<vmem>>, vector<1x4x32xf32>
    %42 = vector.shape_cast %41 : vector<1x4x32xf32> to vector<4x32xf32>
    %c0_31 = arith.constant 0 : index
    %c0_32 = arith.constant 0 : index
    %c0_33 = arith.constant 0 : index
    %43 = vector.load %arg6[%c0_31, %c0_32, %c0_33] : memref<1x4x32xf32, #tpu.memory_space<vmem>>, vector<1x4x32xf32>
    %44 = vector.shape_cast %43 : vector<1x4x32xf32> to vector<4x32xf32>
    %c0_i32 = arith.constant 0 : i32
    %c8_i32 = arith.constant 8 : i32
    %45 = arith.addi %c0_i32, %c8_i32 : i32
    %c1_i32 = arith.constant 1 : i32
    %46:2 = scf.for %arg9 = %c0_i32 to %45 step %c1_i32 iter_args(%arg10 = %42, %arg11 = %44) -> (vector<4x32xf32>, vector<4x32xf32>)  : i32 {
      %c7_i32 = arith.constant 7 : i32
      %47 = arith.subi %c7_i32, %arg9 : i32
      %cst_35 = arith.constant dense<0.000000e+00> : vector<4x256xf32>
      %48 = tpu.matmul %arg10, %38, %cst_35 {dimension_numbers = #tpu.dot_dimension_numbers<[1], [0], [0], [1], [0, 0, 1, 1], [], []>} : vector<4x32xf32>, vector<32x256xf32>, vector<4x256xf32> -> vector<4x256xf32>
      %49 = arith.index_cast %arg9 : i32 to index
      %c0_36 = arith.constant 0 : index
      %c0_37 = arith.constant 0 : index
      %50 = vector.load %arg8[%49, %c0_36, %c0_37] : memref<8x2x256xf32, #tpu.memory_space<vmem>>, vector<1x2x256xf32>
      %51 = vector.shape_cast %50 : vector<1x2x256xf32> to vector<2x256xf32>
      %52 = arith.index_cast %47 : i32 to index
      %c0_38 = arith.constant 0 : index
      %c0_39 = arith.constant 0 : index
      %53 = vector.load %arg8[%52, %c0_38, %c0_39] : memref<8x2x256xf32, #tpu.memory_space<vmem>>, vector<1x2x256xf32>
      %54 = vector.shape_cast %53 : vector<1x2x256xf32> to vector<2x256xf32>
      %55 = tpu.concatenate %51, %54 in 0 : vector<2x256xf32>, vector<2x256xf32> -> vector<4x256xf32>
      %56 = arith.addf %48, %55 : vector<4x256xf32>
      %57 = vector.extract_strided_slice %56 {offsets = [0, 0], sizes = [2, 128], strides = [1, 1]} : vector<4x256xf32> to vector<2x128xf32>
      %58 = vector.extract_strided_slice %56 {offsets = [2, 128], sizes = [2, 128], strides = [1, 1]} : vector<4x256xf32> to vector<2x128xf32>
      %59 = tpu.concatenate %57, %58 in 0 : vector<2x128xf32>, vector<2x128xf32> -> vector<4x128xf32>
      %60 = arith.addf %59, %40 : vector<4x128xf32>
      %61 = vector.extract_strided_slice %60 {offsets = [0, 0], sizes = [4, 32], strides = [1, 1]} : vector<4x128xf32> to vector<4x32xf32>
      %cst_40 = arith.constant 5.000000e-01 : f32
      %62 = vector.broadcast %cst_40 : f32 to vector<4x32xf32>
      %63 = arith.mulf %62, %61 : vector<4x32xf32>
      %64 = math.tanh %63 : vector<4x32xf32>
      %cst_41 = arith.constant 1.000000e+00 : f32
      %65 = vector.broadcast %cst_41 : f32 to vector<4x32xf32>
      %66 = arith.addf %64, %65 : vector<4x32xf32>
      %cst_42 = arith.constant 5.000000e-01 : f32
      %67 = vector.broadcast %cst_42 : f32 to vector<4x32xf32>
      %68 = arith.mulf %67, %66 : vector<4x32xf32>
      %69 = vector.extract_strided_slice %60 {offsets = [0, 32], sizes = [4, 32], strides = [1, 1]} : vector<4x128xf32> to vector<4x32xf32>
      %cst_43 = arith.constant 5.000000e-01 : f32
      %70 = vector.broadcast %cst_43 : f32 to vector<4x32xf32>
      %71 = arith.mulf %70, %69 : vector<4x32xf32>
      %72 = math.tanh %71 : vector<4x32xf32>
      %cst_44 = arith.constant 1.000000e+00 : f32
      %73 = vector.broadcast %cst_44 : f32 to vector<4x32xf32>
      %74 = arith.addf %72, %73 : vector<4x32xf32>
      %cst_45 = arith.constant 5.000000e-01 : f32
      %75 = vector.broadcast %cst_45 : f32 to vector<4x32xf32>
      %76 = arith.mulf %75, %74 : vector<4x32xf32>
      %77 = vector.extract_strided_slice %60 {offsets = [0, 64], sizes = [4, 32], strides = [1, 1]} : vector<4x128xf32> to vector<4x32xf32>
      %78 = math.tanh %77 : vector<4x32xf32>
      %79 = vector.extract_strided_slice %60 {offsets = [0, 96], sizes = [4, 32], strides = [1, 1]} : vector<4x128xf32> to vector<4x32xf32>
      %cst_46 = arith.constant 5.000000e-01 : f32
      %80 = vector.broadcast %cst_46 : f32 to vector<4x32xf32>
      %81 = arith.mulf %80, %79 : vector<4x32xf32>
      %82 = math.tanh %81 : vector<4x32xf32>
      %cst_47 = arith.constant 1.000000e+00 : f32
      %83 = vector.broadcast %cst_47 : f32 to vector<4x32xf32>
      %84 = arith.addf %82, %83 : vector<4x32xf32>
      %cst_48 = arith.constant 5.000000e-01 : f32
      %85 = vector.broadcast %cst_48 : f32 to vector<4x32xf32>
      %86 = arith.mulf %85, %84 : vector<4x32xf32>
      %87 = arith.mulf %76, %arg11 : vector<4x32xf32>
      %88 = arith.mulf %68, %78 : vector<4x32xf32>
      %89 = arith.addf %87, %88 : vector<4x32xf32>
      %90 = math.tanh %89 : vector<4x32xf32>
      %91 = arith.mulf %86, %90 : vector<4x32xf32>
      %92 = vector.extract_strided_slice %91 {offsets = [0, 0], sizes = [2, 32], strides = [1, 1]} : vector<4x32xf32> to vector<2x32xf32>
      %c0_49 = arith.constant 0 : index
      %c0_50 = arith.constant 0 : index
      %93 = arith.index_cast %arg9 : i32 to index
      %c0_51 = arith.constant 0 : index
      %c0_52 = arith.constant 0 : index
      %94 = vector.load %arg7[%c0_49, %c0_50, %93, %c0_51, %c0_52] : memref<1x2x8x2x32xf32, #tpu.memory_space<vmem>>, vector<1x1x1x2x32xf32>
      %95 = vector.shape_cast %94 : vector<1x1x1x2x32xf32> to vector<2x32xf32>
      %96 = vector.shape_cast %92 : vector<2x32xf32> to vector<1x1x1x2x32xf32>
      tpu.vector_store %arg7[%c0_49, %c0_50, %93, %c0_51, %c0_52], %96 {strides = array<i32>} : memref<1x2x8x2x32xf32, #tpu.memory_space<vmem>>, vector<1x1x1x2x32xf32>,
      %97 = vector.extract_strided_slice %91 {offsets = [2, 0], sizes = [2, 32], strides = [1, 1]} : vector<4x32xf32> to vector<2x32xf32>
      %c0_53 = arith.constant 0 : index
      %c1_54 = arith.constant 1 : index
      %98 = arith.index_cast %47 : i32 to index
      %c0_55 = arith.constant 0 : index
      %c0_56 = arith.constant 0 : index
      %99 = vector.load %arg7[%c0_53, %c1_54, %98, %c0_55, %c0_56] : memref<1x2x8x2x32xf32, #tpu.memory_space<vmem>>, vector<1x1x1x2x32xf32>
      %100 = vector.shape_cast %99 : vector<1x1x1x2x32xf32> to vector<2x32xf32>
      %101 = vector.shape_cast %97 : vector<2x32xf32> to vector<1x1x1x2x32xf32>
      tpu.vector_store %arg7[%c0_53, %c1_54, %98, %c0_55, %c0_56], %101 {strides = array<i32>} : memref<1x2x8x2x32xf32, #tpu.memory_space<vmem>>, vector<1x1x1x2x32xf32>,
      scf.yield %91, %89 : vector<4x32xf32>, vector<4x32xf32>
    }
    %c8_i32_34 = arith.constant 8 : i32
    return
  }
  func.func @transform_0(%arg0: i32) -> (i32, i32, i32) {
    %c0_i32 = arith.constant 0 : i32
    %c0_i32_0 = arith.constant 0 : i32
    %c0_i32_1 = arith.constant 0 : i32
    return %arg0, %c0_i32, %c0_i32_0 : i32, i32, i32
  }
  func.func @transform_1(%arg0: i32) -> (i32, i32, i32) {
    %c0_i32 = arith.constant 0 : i32
    %c0_i32_0 = arith.constant 0 : i32
    %c0_i32_1 = arith.constant 0 : i32
    return %arg0, %c0_i32, %c0_i32_0 : i32, i32, i32
  }
  func.func @transform_2(%arg0: i32) -> (i32, i32, i32) {
    %c0_i32 = arith.constant 0 : i32
    %c0_i32_0 = arith.constant 0 : i32
    %c0_i32_1 = arith.constant 0 : i32
    return %arg0, %c0_i32, %c0_i32_0 : i32, i32, i32
  }
  func.func @transform_3(%arg0: i32) -> (i32, i32, i32) {
    %c0_i32 = arith.constant 0 : i32
    %c0_i32_0 = arith.constant 0 : i32
    %c0_i32_1 = arith.constant 0 : i32
    return %arg0, %c0_i32, %c0_i32_0 : i32, i32, i32
  }
  func.func @transform_4(%arg0: i32) -> (i32, i32, i32) {
    %c0_i32 = arith.constant 0 : i32
    %c0_i32_0 = arith.constant 0 : i32
    %c0_i32_1 = arith.constant 0 : i32
    return %arg0, %c0_i32, %c0_i32_0 : i32, i32, i32
  }
  func.func @transform_5(%arg0: i32) -> (i32, i32, i32) {
    %c0_i32 = arith.constant 0 : i32
    %c0_i32_0 = arith.constant 0 : i32
    %c0_i32_1 = arith.constant 0 : i32
    return %arg0, %c0_i32, %c0_i32_0 : i32, i32, i32
  }
  func.func @transform_6(%arg0: i32) -> (i32, i32, i32, i32, i32) {
    %c0_i32 = arith.constant 0 : i32
    %c0_i32_0 = arith.constant 0 : i32
    %c0_i32_1 = arith.constant 0 : i32
    %c0_i32_2 = arith.constant 0 : i32
    %c0_i32_3 = arith.constant 0 : i32
    return %arg0, %c0_i32, %c0_i32_0, %c0_i32_1, %c0_i32_2 : i32, i32, i32, i32, i32
  }
}

module attributes {stable_mosaic.version = 11 : i64} {
  func.func @epilogue_kernel(%arg0: memref<3x2x8x2x32xf32, #tpu.memory_space<vmem>>, %arg1: memref<2x64xf32, #tpu.memory_space<vmem>>, %arg2: memref<1x2xf32, #tpu.memory_space<vmem>>, %arg3: memref<448x32xf32, #tpu.memory_space<vmem>>, %arg4: memref<1x32xf32, #tpu.memory_space<vmem>>, %arg5: memref<96x1xf32, #tpu.memory_space<vmem>>, %arg6: memref<1x1xf32, #tpu.memory_space<vmem>>, %arg7: memref<2x8x1xf32, #tpu.memory_space<vmem>>, %arg8: memref<2x8x1xf32, #tpu.memory_space<vmem>>, %arg9: memref<2x8x1xf32, #tpu.memory_space<vmem>>, %arg10: memref<2x8x1xf32, #tpu.memory_space<vmem>>, %arg11: memref<2x14x64xf32, #tpu.memory_space<vmem>>, %arg12: memref<2x10x32xf32, #tpu.memory_space<vmem>>) attributes {dimension_semantics = [], scalar_prefetch = 0 : i64, scratch_operands = 2 : i64, tpu.core_type = #tpu.core_type<tc>} {
    %c0 = arith.constant 0 : index
    %c0_0 = arith.constant 0 : index
    %0 = vector.load %arg1[%c0, %c0_0] : memref<2x64xf32, #tpu.memory_space<vmem>>, vector<1x32xf32>
    %c0_1 = arith.constant 0 : index
    %c32 = arith.constant 32 : index
    %1 = vector.load %arg1[%c0_1, %c32] : memref<2x64xf32, #tpu.memory_space<vmem>>, vector<1x32xf32>
    %c0_2 = arith.constant 0 : index
    %c0_3 = arith.constant 0 : index
    %c0_4 = arith.constant 0 : index
    %c0_5 = arith.constant 0 : index
    %c0_6 = arith.constant 0 : index
    %2 = vector.load %arg0[%c0_2, %c0_3, %c0_4, %c0_5, %c0_6] : memref<3x2x8x2x32xf32, #tpu.memory_space<vmem>>, vector<1x1x8x2x32xf32>
    %3 = vector.shape_cast %2 : vector<1x1x8x2x32xf32> to vector<8x2x32xf32>
    %4 = vector.shape_cast %0 : vector<1x32xf32> to vector<1x1x32xf32>
    %5 = vector.broadcast %4 : vector<1x1x32xf32> to vector<8x2x32xf32>
    %6 = arith.mulf %3, %5 : vector<8x2x32xf32>
    %cst = arith.constant dense<0.000000e+00> : vector<8x2xf32>
    %7 = vector.multi_reduction <add>, %6, %cst [2] : vector<8x2x32xf32> to vector<8x2xf32>
    %c0_7 = arith.constant 0 : index
    %c1 = arith.constant 1 : index
    %c0_8 = arith.constant 0 : index
    %c0_9 = arith.constant 0 : index
    %c0_10 = arith.constant 0 : index
    %8 = vector.load %arg0[%c0_7, %c1, %c0_8, %c0_9, %c0_10] : memref<3x2x8x2x32xf32, #tpu.memory_space<vmem>>, vector<1x1x8x2x32xf32>
    %9 = vector.shape_cast %8 : vector<1x1x8x2x32xf32> to vector<8x2x32xf32>
    %10 = vector.shape_cast %1 : vector<1x32xf32> to vector<1x1x32xf32>
    %11 = vector.broadcast %10 : vector<1x1x32xf32> to vector<8x2x32xf32>
    %12 = arith.mulf %9, %11 : vector<8x2x32xf32>
    %cst_11 = arith.constant dense<0.000000e+00> : vector<8x2xf32>
    %13 = vector.multi_reduction <add>, %12, %cst_11 [2] : vector<8x2x32xf32> to vector<8x2xf32>
    %14 = arith.addf %7, %13 : vector<8x2xf32>
    %c0_12 = arith.constant 0 : index
    %c0_13 = arith.constant 0 : index
    %15 = vector.load %arg2[%c0_12, %c0_13] : memref<1x2xf32, #tpu.memory_space<vmem>>, vector<1x1xf32>
    %16 = vector.broadcast %15 : vector<1x1xf32> to vector<8x2xf32>
    %17 = arith.addf %14, %16 : vector<8x2xf32>
    %c1_14 = arith.constant 1 : index
    %c0_15 = arith.constant 0 : index
    %18 = vector.load %arg1[%c1_14, %c0_15] : memref<2x64xf32, #tpu.memory_space<vmem>>, vector<1x32xf32>
    %c1_16 = arith.constant 1 : index
    %c32_17 = arith.constant 32 : index
    %19 = vector.load %arg1[%c1_16, %c32_17] : memref<2x64xf32, #tpu.memory_space<vmem>>, vector<1x32xf32>
    %c1_18 = arith.constant 1 : index
    %c0_19 = arith.constant 0 : index
    %c0_20 = arith.constant 0 : index
    %c0_21 = arith.constant 0 : index
    %c0_22 = arith.constant 0 : index
    %20 = vector.load %arg0[%c1_18, %c0_19, %c0_20, %c0_21, %c0_22] : memref<3x2x8x2x32xf32, #tpu.memory_space<vmem>>, vector<1x1x8x2x32xf32>
    %21 = vector.shape_cast %20 : vector<1x1x8x2x32xf32> to vector<8x2x32xf32>
    %22 = vector.shape_cast %18 : vector<1x32xf32> to vector<1x1x32xf32>
    %23 = vector.broadcast %22 : vector<1x1x32xf32> to vector<8x2x32xf32>
    %24 = arith.mulf %21, %23 : vector<8x2x32xf32>
    %cst_23 = arith.constant dense<0.000000e+00> : vector<8x2xf32>
    %25 = vector.multi_reduction <add>, %24, %cst_23 [2] : vector<8x2x32xf32> to vector<8x2xf32>
    %c1_24 = arith.constant 1 : index
    %c1_25 = arith.constant 1 : index
    %c0_26 = arith.constant 0 : index
    %c0_27 = arith.constant 0 : index
    %c0_28 = arith.constant 0 : index
    %26 = vector.load %arg0[%c1_24, %c1_25, %c0_26, %c0_27, %c0_28] : memref<3x2x8x2x32xf32, #tpu.memory_space<vmem>>, vector<1x1x8x2x32xf32>
    %27 = vector.shape_cast %26 : vector<1x1x8x2x32xf32> to vector<8x2x32xf32>
    %28 = vector.shape_cast %19 : vector<1x32xf32> to vector<1x1x32xf32>
    %29 = vector.broadcast %28 : vector<1x1x32xf32> to vector<8x2x32xf32>
    %30 = arith.mulf %27, %29 : vector<8x2x32xf32>
    %cst_29 = arith.constant dense<0.000000e+00> : vector<8x2xf32>
    %31 = vector.multi_reduction <add>, %30, %cst_29 [2] : vector<8x2x32xf32> to vector<8x2xf32>
    %32 = arith.addf %25, %31 : vector<8x2xf32>
    %c0_30 = arith.constant 0 : index
    %c1_31 = arith.constant 1 : index
    %33 = vector.load %arg2[%c0_30, %c1_31] : memref<1x2xf32, #tpu.memory_space<vmem>>, vector<1x1xf32>
    %34 = vector.broadcast %33 : vector<1x1xf32> to vector<8x2xf32>
    %35 = arith.addf %32, %34 : vector<8x2xf32>
    %cst_32 = arith.constant 0.000000e+00 : f32
    %36 = vector.broadcast %cst_32 : f32 to vector<2x14x64xf32>
    %c0_33 = arith.constant 0 : index
    %c0_34 = arith.constant 0 : index
    %c0_35 = arith.constant 0 : index
    %37 = vector.load %arg11[%c0_33, %c0_34, %c0_35] : memref<2x14x64xf32, #tpu.memory_space<vmem>>, vector<2x14x64xf32>
    tpu.vector_store %arg11[%c0_33, %c0_34, %c0_35], %36 {strides = array<i32>} : memref<2x14x64xf32, #tpu.memory_space<vmem>>, vector<2x14x64xf32>,
    %cst_36 = arith.constant 0.000000e+00 : f32
    %38 = vector.broadcast %cst_36 : f32 to vector<2x10x32xf32>
    %c0_37 = arith.constant 0 : index
    %c0_38 = arith.constant 0 : index
    %c0_39 = arith.constant 0 : index
    %39 = vector.load %arg12[%c0_37, %c0_38, %c0_39] : memref<2x10x32xf32, #tpu.memory_space<vmem>>, vector<2x10x32xf32>
    tpu.vector_store %arg12[%c0_37, %c0_38, %c0_39], %38 {strides = array<i32>} : memref<2x10x32xf32, #tpu.memory_space<vmem>>, vector<2x10x32xf32>,
    %c2 = arith.constant 2 : index
    %c0_40 = arith.constant 0 : index
    %c0_41 = arith.constant 0 : index
    %c0_42 = arith.constant 0 : index
    %c0_43 = arith.constant 0 : index
    %40 = vector.load %arg0[%c2, %c0_40, %c0_41, %c0_42, %c0_43] : memref<3x2x8x2x32xf32, #tpu.memory_space<vmem>>, vector<1x1x1x2x32xf32>
    %41 = vector.shape_cast %40 : vector<1x1x1x2x32xf32> to vector<2x32xf32>
    %c2_44 = arith.constant 2 : index
    %c1_45 = arith.constant 1 : index
    %c0_46 = arith.constant 0 : index
    %c0_47 = arith.constant 0 : index
    %c0_48 = arith.constant 0 : index
    %42 = vector.load %arg0[%c2_44, %c1_45, %c0_46, %c0_47, %c0_48] : memref<3x2x8x2x32xf32, #tpu.memory_space<vmem>>, vector<1x1x1x2x32xf32>
    %43 = vector.shape_cast %42 : vector<1x1x1x2x32xf32> to vector<2x32xf32>
    %44 = tpu.concatenate %41, %43 in 1 : vector<2x32xf32>, vector<2x32xf32> -> vector<2x64xf32>
    %45 = vector.extract_strided_slice %44 {offsets = [0, 0], sizes = [1, 64], strides = [1, 1]} : vector<2x64xf32> to vector<1x64xf32>
    %c0_49 = arith.constant 0 : index
    %c3 = arith.constant 3 : index
    %c0_50 = arith.constant 0 : index
    %46 = vector.load %arg11[%c0_49, %c3, %c0_50] : memref<2x14x64xf32, #tpu.memory_space<vmem>>, vector<1x1x64xf32>
    %47 = vector.shape_cast %46 : vector<1x1x64xf32> to vector<1x64xf32>
    %48 = vector.shape_cast %45 : vector<1x64xf32> to vector<1x1x64xf32>
    tpu.vector_store %arg11[%c0_49, %c3, %c0_50], %48 {strides = array<i32>} : memref<2x14x64xf32, #tpu.memory_space<vmem>>, vector<1x1x64xf32>,
    %49 = vector.extract_strided_slice %44 {offsets = [1, 0], sizes = [1, 64], strides = [1, 1]} : vector<2x64xf32> to vector<1x64xf32>
    %c1_51 = arith.constant 1 : index
    %c3_52 = arith.constant 3 : index
    %c0_53 = arith.constant 0 : index
    %50 = vector.load %arg11[%c1_51, %c3_52, %c0_53] : memref<2x14x64xf32, #tpu.memory_space<vmem>>, vector<1x1x64xf32>
    %51 = vector.shape_cast %50 : vector<1x1x64xf32> to vector<1x64xf32>
    %52 = vector.shape_cast %49 : vector<1x64xf32> to vector<1x1x64xf32>
    tpu.vector_store %arg11[%c1_51, %c3_52, %c0_53], %52 {strides = array<i32>} : memref<2x14x64xf32, #tpu.memory_space<vmem>>, vector<1x1x64xf32>,
    %c2_54 = arith.constant 2 : index
    %c0_55 = arith.constant 0 : index
    %c1_56 = arith.constant 1 : index
    %c0_57 = arith.constant 0 : index
    %c0_58 = arith.constant 0 : index
    %53 = vector.load %arg0[%c2_54, %c0_55, %c1_56, %c0_57, %c0_58] : memref<3x2x8x2x32xf32, #tpu.memory_space<vmem>>, vector<1x1x1x2x32xf32>
    %54 = vector.shape_cast %53 : vector<1x1x1x2x32xf32> to vector<2x32xf32>
    %c2_59 = arith.constant 2 : index
    %c1_60 = arith.constant 1 : index
    %c1_61 = arith.constant 1 : index
    %c0_62 = arith.constant 0 : index
    %c0_63 = arith.constant 0 : index
    %55 = vector.load %arg0[%c2_59, %c1_60, %c1_61, %c0_62, %c0_63] : memref<3x2x8x2x32xf32, #tpu.memory_space<vmem>>, vector<1x1x1x2x32xf32>
    %56 = vector.shape_cast %55 : vector<1x1x1x2x32xf32> to vector<2x32xf32>
    %57 = tpu.concatenate %54, %56 in 1 : vector<2x32xf32>, vector<2x32xf32> -> vector<2x64xf32>
    %58 = vector.extract_strided_slice %57 {offsets = [0, 0], sizes = [1, 64], strides = [1, 1]} : vector<2x64xf32> to vector<1x64xf32>
    %c0_64 = arith.constant 0 : index
    %c4 = arith.constant 4 : index
    %c0_65 = arith.constant 0 : index
    %59 = vector.load %arg11[%c0_64, %c4, %c0_65] : memref<2x14x64xf32, #tpu.memory_space<vmem>>, vector<1x1x64xf32>
    %60 = vector.shape_cast %59 : vector<1x1x64xf32> to vector<1x64xf32>
    %61 = vector.shape_cast %58 : vector<1x64xf32> to vector<1x1x64xf32>
    tpu.vector_store %arg11[%c0_64, %c4, %c0_65], %61 {strides = array<i32>} : memref<2x14x64xf32, #tpu.memory_space<vmem>>, vector<1x1x64xf32>,
    %62 = vector.extract_strided_slice %57 {offsets = [1, 0], sizes = [1, 64], strides = [1, 1]} : vector<2x64xf32> to vector<1x64xf32>
    %c1_66 = arith.constant 1 : index
    %c4_67 = arith.constant 4 : index
    %c0_68 = arith.constant 0 : index
    %63 = vector.load %arg11[%c1_66, %c4_67, %c0_68] : memref<2x14x64xf32, #tpu.memory_space<vmem>>, vector<1x1x64xf32>
    %64 = vector.shape_cast %63 : vector<1x1x64xf32> to vector<1x64xf32>
    %65 = vector.shape_cast %62 : vector<1x64xf32> to vector<1x1x64xf32>
    tpu.vector_store %arg11[%c1_66, %c4_67, %c0_68], %65 {strides = array<i32>} : memref<2x14x64xf32, #tpu.memory_space<vmem>>, vector<1x1x64xf32>,
    %c2_69 = arith.constant 2 : index
    %c0_70 = arith.constant 0 : index
    %c2_71 = arith.constant 2 : index
    %c0_72 = arith.constant 0 : index
    %c0_73 = arith.constant 0 : index
    %66 = vector.load %arg0[%c2_69, %c0_70, %c2_71, %c0_72, %c0_73] : memref<3x2x8x2x32xf32, #tpu.memory_space<vmem>>, vector<1x1x1x2x32xf32>
    %67 = vector.shape_cast %66 : vector<1x1x1x2x32xf32> to vector<2x32xf32>
    %c2_74 = arith.constant 2 : index
    %c1_75 = arith.constant 1 : index
    %c2_76 = arith.constant 2 : index
    %c0_77 = arith.constant 0 : index
    %c0_78 = arith.constant 0 : index
    %68 = vector.load %arg0[%c2_74, %c1_75, %c2_76, %c0_77, %c0_78] : memref<3x2x8x2x32xf32, #tpu.memory_space<vmem>>, vector<1x1x1x2x32xf32>
    %69 = vector.shape_cast %68 : vector<1x1x1x2x32xf32> to vector<2x32xf32>
    %70 = tpu.concatenate %67, %69 in 1 : vector<2x32xf32>, vector<2x32xf32> -> vector<2x64xf32>
    %71 = vector.extract_strided_slice %70 {offsets = [0, 0], sizes = [1, 64], strides = [1, 1]} : vector<2x64xf32> to vector<1x64xf32>
    %c0_79 = arith.constant 0 : index
    %c5 = arith.constant 5 : index
    %c0_80 = arith.constant 0 : index
    %72 = vector.load %arg11[%c0_79, %c5, %c0_80] : memref<2x14x64xf32, #tpu.memory_space<vmem>>, vector<1x1x64xf32>
    %73 = vector.shape_cast %72 : vector<1x1x64xf32> to vector<1x64xf32>
    %74 = vector.shape_cast %71 : vector<1x64xf32> to vector<1x1x64xf32>
    tpu.vector_store %arg11[%c0_79, %c5, %c0_80], %74 {strides = array<i32>} : memref<2x14x64xf32, #tpu.memory_space<vmem>>, vector<1x1x64xf32>,
    %75 = vector.extract_strided_slice %70 {offsets = [1, 0], sizes = [1, 64], strides = [1, 1]} : vector<2x64xf32> to vector<1x64xf32>
    %c1_81 = arith.constant 1 : index
    %c5_82 = arith.constant 5 : index
    %c0_83 = arith.constant 0 : index
    %76 = vector.load %arg11[%c1_81, %c5_82, %c0_83] : memref<2x14x64xf32, #tpu.memory_space<vmem>>, vector<1x1x64xf32>
    %77 = vector.shape_cast %76 : vector<1x1x64xf32> to vector<1x64xf32>
    %78 = vector.shape_cast %75 : vector<1x64xf32> to vector<1x1x64xf32>
    tpu.vector_store %arg11[%c1_81, %c5_82, %c0_83], %78 {strides = array<i32>} : memref<2x14x64xf32, #tpu.memory_space<vmem>>, vector<1x1x64xf32>,
    %c2_84 = arith.constant 2 : index
    %c0_85 = arith.constant 0 : index
    %c3_86 = arith.constant 3 : index
    %c0_87 = arith.constant 0 : index
    %c0_88 = arith.constant 0 : index
    %79 = vector.load %arg0[%c2_84, %c0_85, %c3_86, %c0_87, %c0_88] : memref<3x2x8x2x32xf32, #tpu.memory_space<vmem>>, vector<1x1x1x2x32xf32>
    %80 = vector.shape_cast %79 : vector<1x1x1x2x32xf32> to vector<2x32xf32>
    %c2_89 = arith.constant 2 : index
    %c1_90 = arith.constant 1 : index
    %c3_91 = arith.constant 3 : index
    %c0_92 = arith.constant 0 : index
    %c0_93 = arith.constant 0 : index
    %81 = vector.load %arg0[%c2_89, %c1_90, %c3_91, %c0_92, %c0_93] : memref<3x2x8x2x32xf32, #tpu.memory_space<vmem>>, vector<1x1x1x2x32xf32>
    %82 = vector.shape_cast %81 : vector<1x1x1x2x32xf32> to vector<2x32xf32>
    %83 = tpu.concatenate %80, %82 in 1 : vector<2x32xf32>, vector<2x32xf32> -> vector<2x64xf32>
    %84 = vector.extract_strided_slice %83 {offsets = [0, 0], sizes = [1, 64], strides = [1, 1]} : vector<2x64xf32> to vector<1x64xf32>
    %c0_94 = arith.constant 0 : index
    %c6 = arith.constant 6 : index
    %c0_95 = arith.constant 0 : index
    %85 = vector.load %arg11[%c0_94, %c6, %c0_95] : memref<2x14x64xf32, #tpu.memory_space<vmem>>, vector<1x1x64xf32>
    %86 = vector.shape_cast %85 : vector<1x1x64xf32> to vector<1x64xf32>
    %87 = vector.shape_cast %84 : vector<1x64xf32> to vector<1x1x64xf32>
    tpu.vector_store %arg11[%c0_94, %c6, %c0_95], %87 {strides = array<i32>} : memref<2x14x64xf32, #tpu.memory_space<vmem>>, vector<1x1x64xf32>,
    %88 = vector.extract_strided_slice %83 {offsets = [1, 0], sizes = [1, 64], strides = [1, 1]} : vector<2x64xf32> to vector<1x64xf32>
    %c1_96 = arith.constant 1 : index
    %c6_97 = arith.constant 6 : index
    %c0_98 = arith.constant 0 : index
    %89 = vector.load %arg11[%c1_96, %c6_97, %c0_98] : memref<2x14x64xf32, #tpu.memory_space<vmem>>, vector<1x1x64xf32>
    %90 = vector.shape_cast %89 : vector<1x1x64xf32> to vector<1x64xf32>
    %91 = vector.shape_cast %88 : vector<1x64xf32> to vector<1x1x64xf32>
    tpu.vector_store %arg11[%c1_96, %c6_97, %c0_98], %91 {strides = array<i32>} : memref<2x14x64xf32, #tpu.memory_space<vmem>>, vector<1x1x64xf32>,
    %c2_99 = arith.constant 2 : index
    %c0_100 = arith.constant 0 : index
    %c4_101 = arith.constant 4 : index
    %c0_102 = arith.constant 0 : index
    %c0_103 = arith.constant 0 : index
    %92 = vector.load %arg0[%c2_99, %c0_100, %c4_101, %c0_102, %c0_103] : memref<3x2x8x2x32xf32, #tpu.memory_space<vmem>>, vector<1x1x1x2x32xf32>
    %93 = vector.shape_cast %92 : vector<1x1x1x2x32xf32> to vector<2x32xf32>
    %c2_104 = arith.constant 2 : index
    %c1_105 = arith.constant 1 : index
    %c4_106 = arith.constant 4 : index
    %c0_107 = arith.constant 0 : index
    %c0_108 = arith.constant 0 : index
    %94 = vector.load %arg0[%c2_104, %c1_105, %c4_106, %c0_107, %c0_108] : memref<3x2x8x2x32xf32, #tpu.memory_space<vmem>>, vector<1x1x1x2x32xf32>
    %95 = vector.shape_cast %94 : vector<1x1x1x2x32xf32> to vector<2x32xf32>
    %96 = tpu.concatenate %93, %95 in 1 : vector<2x32xf32>, vector<2x32xf32> -> vector<2x64xf32>
    %97 = vector.extract_strided_slice %96 {offsets = [0, 0], sizes = [1, 64], strides = [1, 1]} : vector<2x64xf32> to vector<1x64xf32>
    %c0_109 = arith.constant 0 : index
    %c7 = arith.constant 7 : index
    %c0_110 = arith.constant 0 : index
    %98 = vector.load %arg11[%c0_109, %c7, %c0_110] : memref<2x14x64xf32, #tpu.memory_space<vmem>>, vector<1x1x64xf32>
    %99 = vector.shape_cast %98 : vector<1x1x64xf32> to vector<1x64xf32>
    %100 = vector.shape_cast %97 : vector<1x64xf32> to vector<1x1x64xf32>
    tpu.vector_store %arg11[%c0_109, %c7, %c0_110], %100 {strides = array<i32>} : memref<2x14x64xf32, #tpu.memory_space<vmem>>, vector<1x1x64xf32>,
    %101 = vector.extract_strided_slice %96 {offsets = [1, 0], sizes = [1, 64], strides = [1, 1]} : vector<2x64xf32> to vector<1x64xf32>
    %c1_111 = arith.constant 1 : index
    %c7_112 = arith.constant 7 : index
    %c0_113 = arith.constant 0 : index
    %102 = vector.load %arg11[%c1_111, %c7_112, %c0_113] : memref<2x14x64xf32, #tpu.memory_space<vmem>>, vector<1x1x64xf32>
    %103 = vector.shape_cast %102 : vector<1x1x64xf32> to vector<1x64xf32>
    %104 = vector.shape_cast %101 : vector<1x64xf32> to vector<1x1x64xf32>
    tpu.vector_store %arg11[%c1_111, %c7_112, %c0_113], %104 {strides = array<i32>} : memref<2x14x64xf32, #tpu.memory_space<vmem>>, vector<1x1x64xf32>,
    %c2_114 = arith.constant 2 : index
    %c0_115 = arith.constant 0 : index
    %c5_116 = arith.constant 5 : index
    %c0_117 = arith.constant 0 : index
    %c0_118 = arith.constant 0 : index
    %105 = vector.load %arg0[%c2_114, %c0_115, %c5_116, %c0_117, %c0_118] : memref<3x2x8x2x32xf32, #tpu.memory_space<vmem>>, vector<1x1x1x2x32xf32>
    %106 = vector.shape_cast %105 : vector<1x1x1x2x32xf32> to vector<2x32xf32>
    %c2_119 = arith.constant 2 : index
    %c1_120 = arith.constant 1 : index
    %c5_121 = arith.constant 5 : index
    %c0_122 = arith.constant 0 : index
    %c0_123 = arith.constant 0 : index
    %107 = vector.load %arg0[%c2_119, %c1_120, %c5_121, %c0_122, %c0_123] : memref<3x2x8x2x32xf32, #tpu.memory_space<vmem>>, vector<1x1x1x2x32xf32>
    %108 = vector.shape_cast %107 : vector<1x1x1x2x32xf32> to vector<2x32xf32>
    %109 = tpu.concatenate %106, %108 in 1 : vector<2x32xf32>, vector<2x32xf32> -> vector<2x64xf32>
    %110 = vector.extract_strided_slice %109 {offsets = [0, 0], sizes = [1, 64], strides = [1, 1]} : vector<2x64xf32> to vector<1x64xf32>
    %c0_124 = arith.constant 0 : index
    %c8 = arith.constant 8 : index
    %c0_125 = arith.constant 0 : index
    %111 = vector.load %arg11[%c0_124, %c8, %c0_125] : memref<2x14x64xf32, #tpu.memory_space<vmem>>, vector<1x1x64xf32>
    %112 = vector.shape_cast %111 : vector<1x1x64xf32> to vector<1x64xf32>
    %113 = vector.shape_cast %110 : vector<1x64xf32> to vector<1x1x64xf32>
    tpu.vector_store %arg11[%c0_124, %c8, %c0_125], %113 {strides = array<i32>} : memref<2x14x64xf32, #tpu.memory_space<vmem>>, vector<1x1x64xf32>,
    %114 = vector.extract_strided_slice %109 {offsets = [1, 0], sizes = [1, 64], strides = [1, 1]} : vector<2x64xf32> to vector<1x64xf32>
    %c1_126 = arith.constant 1 : index
    %c8_127 = arith.constant 8 : index
    %c0_128 = arith.constant 0 : index
    %115 = vector.load %arg11[%c1_126, %c8_127, %c0_128] : memref<2x14x64xf32, #tpu.memory_space<vmem>>, vector<1x1x64xf32>
    %116 = vector.shape_cast %115 : vector<1x1x64xf32> to vector<1x64xf32>
    %117 = vector.shape_cast %114 : vector<1x64xf32> to vector<1x1x64xf32>
    tpu.vector_store %arg11[%c1_126, %c8_127, %c0_128], %117 {strides = array<i32>} : memref<2x14x64xf32, #tpu.memory_space<vmem>>, vector<1x1x64xf32>,
    %c2_129 = arith.constant 2 : index
    %c0_130 = arith.constant 0 : index
    %c6_131 = arith.constant 6 : index
    %c0_132 = arith.constant 0 : index
    %c0_133 = arith.constant 0 : index
    %118 = vector.load %arg0[%c2_129, %c0_130, %c6_131, %c0_132, %c0_133] : memref<3x2x8x2x32xf32, #tpu.memory_space<vmem>>, vector<1x1x1x2x32xf32>
    %119 = vector.shape_cast %118 : vector<1x1x1x2x32xf32> to vector<2x32xf32>
    %c2_134 = arith.constant 2 : index
    %c1_135 = arith.constant 1 : index
    %c6_136 = arith.constant 6 : index
    %c0_137 = arith.constant 0 : index
    %c0_138 = arith.constant 0 : index
    %120 = vector.load %arg0[%c2_134, %c1_135, %c6_136, %c0_137, %c0_138] : memref<3x2x8x2x32xf32, #tpu.memory_space<vmem>>, vector<1x1x1x2x32xf32>
    %121 = vector.shape_cast %120 : vector<1x1x1x2x32xf32> to vector<2x32xf32>
    %122 = tpu.concatenate %119, %121 in 1 : vector<2x32xf32>, vector<2x32xf32> -> vector<2x64xf32>
    %123 = vector.extract_strided_slice %122 {offsets = [0, 0], sizes = [1, 64], strides = [1, 1]} : vector<2x64xf32> to vector<1x64xf32>
    %c0_139 = arith.constant 0 : index
    %c9 = arith.constant 9 : index
    %c0_140 = arith.constant 0 : index
    %124 = vector.load %arg11[%c0_139, %c9, %c0_140] : memref<2x14x64xf32, #tpu.memory_space<vmem>>, vector<1x1x64xf32>
    %125 = vector.shape_cast %124 : vector<1x1x64xf32> to vector<1x64xf32>
    %126 = vector.shape_cast %123 : vector<1x64xf32> to vector<1x1x64xf32>
    tpu.vector_store %arg11[%c0_139, %c9, %c0_140], %126 {strides = array<i32>} : memref<2x14x64xf32, #tpu.memory_space<vmem>>, vector<1x1x64xf32>,
    %127 = vector.extract_strided_slice %122 {offsets = [1, 0], sizes = [1, 64], strides = [1, 1]} : vector<2x64xf32> to vector<1x64xf32>
    %c1_141 = arith.constant 1 : index
    %c9_142 = arith.constant 9 : index
    %c0_143 = arith.constant 0 : index
    %128 = vector.load %arg11[%c1_141, %c9_142, %c0_143] : memref<2x14x64xf32, #tpu.memory_space<vmem>>, vector<1x1x64xf32>
    %129 = vector.shape_cast %128 : vector<1x1x64xf32> to vector<1x64xf32>
    %130 = vector.shape_cast %127 : vector<1x64xf32> to vector<1x1x64xf32>
    tpu.vector_store %arg11[%c1_141, %c9_142, %c0_143], %130 {strides = array<i32>} : memref<2x14x64xf32, #tpu.memory_space<vmem>>, vector<1x1x64xf32>,
    %c2_144 = arith.constant 2 : index
    %c0_145 = arith.constant 0 : index
    %c7_146 = arith.constant 7 : index
    %c0_147 = arith.constant 0 : index
    %c0_148 = arith.constant 0 : index
    %131 = vector.load %arg0[%c2_144, %c0_145, %c7_146, %c0_147, %c0_148] : memref<3x2x8x2x32xf32, #tpu.memory_space<vmem>>, vector<1x1x1x2x32xf32>
    %132 = vector.shape_cast %131 : vector<1x1x1x2x32xf32> to vector<2x32xf32>
    %c2_149 = arith.constant 2 : index
    %c1_150 = arith.constant 1 : index
    %c7_151 = arith.constant 7 : index
    %c0_152 = arith.constant 0 : index
    %c0_153 = arith.constant 0 : index
    %133 = vector.load %arg0[%c2_149, %c1_150, %c7_151, %c0_152, %c0_153] : memref<3x2x8x2x32xf32, #tpu.memory_space<vmem>>, vector<1x1x1x2x32xf32>
    %134 = vector.shape_cast %133 : vector<1x1x1x2x32xf32> to vector<2x32xf32>
    %135 = tpu.concatenate %132, %134 in 1 : vector<2x32xf32>, vector<2x32xf32> -> vector<2x64xf32>
    %136 = vector.extract_strided_slice %135 {offsets = [0, 0], sizes = [1, 64], strides = [1, 1]} : vector<2x64xf32> to vector<1x64xf32>
    %c0_154 = arith.constant 0 : index
    %c10 = arith.constant 10 : index
    %c0_155 = arith.constant 0 : index
    %137 = vector.load %arg11[%c0_154, %c10, %c0_155] : memref<2x14x64xf32, #tpu.memory_space<vmem>>, vector<1x1x64xf32>
    %138 = vector.shape_cast %137 : vector<1x1x64xf32> to vector<1x64xf32>
    %139 = vector.shape_cast %136 : vector<1x64xf32> to vector<1x1x64xf32>
    tpu.vector_store %arg11[%c0_154, %c10, %c0_155], %139 {strides = array<i32>} : memref<2x14x64xf32, #tpu.memory_space<vmem>>, vector<1x1x64xf32>,
    %140 = vector.extract_strided_slice %135 {offsets = [1, 0], sizes = [1, 64], strides = [1, 1]} : vector<2x64xf32> to vector<1x64xf32>
    %c1_156 = arith.constant 1 : index
    %c10_157 = arith.constant 10 : index
    %c0_158 = arith.constant 0 : index
    %141 = vector.load %arg11[%c1_156, %c10_157, %c0_158] : memref<2x14x64xf32, #tpu.memory_space<vmem>>, vector<1x1x64xf32>
    %142 = vector.shape_cast %141 : vector<1x1x64xf32> to vector<1x64xf32>
    %143 = vector.shape_cast %140 : vector<1x64xf32> to vector<1x1x64xf32>
    tpu.vector_store %arg11[%c1_156, %c10_157, %c0_158], %143 {strides = array<i32>} : memref<2x14x64xf32, #tpu.memory_space<vmem>>, vector<1x1x64xf32>,
    %c0_159 = arith.constant 0 : index
    %c0_160 = arith.constant 0 : index
    %c0_161 = arith.constant 0 : index
    %144 = vector.load %arg11[%c0_159, %c0_160, %c0_161] : memref<2x14x64xf32, #tpu.memory_space<vmem>>, vector<1x8x64xf32>
    %145 = vector.shape_cast %144 : vector<1x8x64xf32> to vector<8x64xf32>
    %c0_162 = arith.constant 0 : index
    %c1_163 = arith.constant 1 : index
    %c0_164 = arith.constant 0 : index
    %146 = vector.load %arg11[%c0_162, %c1_163, %c0_164] : memref<2x14x64xf32, #tpu.memory_space<vmem>>, vector<1x8x64xf32>
    %147 = vector.shape_cast %146 : vector<1x8x64xf32> to vector<8x64xf32>
    %c0_165 = arith.constant 0 : index
    %c2_166 = arith.constant 2 : index
    %c0_167 = arith.constant 0 : index
    %148 = vector.load %arg11[%c0_165, %c2_166, %c0_167] : memref<2x14x64xf32, #tpu.memory_space<vmem>>, vector<1x8x64xf32>
    %149 = vector.shape_cast %148 : vector<1x8x64xf32> to vector<8x64xf32>
    %c0_168 = arith.constant 0 : index
    %c3_169 = arith.constant 3 : index
    %c0_170 = arith.constant 0 : index
    %150 = vector.load %arg11[%c0_168, %c3_169, %c0_170] : memref<2x14x64xf32, #tpu.memory_space<vmem>>, vector<1x8x64xf32>
    %151 = vector.shape_cast %150 : vector<1x8x64xf32> to vector<8x64xf32>
    %c0_171 = arith.constant 0 : index
    %c4_172 = arith.constant 4 : index
    %c0_173 = arith.constant 0 : index
    %152 = vector.load %arg11[%c0_171, %c4_172, %c0_173] : memref<2x14x64xf32, #tpu.memory_space<vmem>>, vector<1x8x64xf32>
    %153 = vector.shape_cast %152 : vector<1x8x64xf32> to vector<8x64xf32>
    %c0_174 = arith.constant 0 : index
    %c5_175 = arith.constant 5 : index
    %c0_176 = arith.constant 0 : index
    %154 = vector.load %arg11[%c0_174, %c5_175, %c0_176] : memref<2x14x64xf32, #tpu.memory_space<vmem>>, vector<1x8x64xf32>
    %155 = vector.shape_cast %154 : vector<1x8x64xf32> to vector<8x64xf32>
    %c0_177 = arith.constant 0 : index
    %c6_178 = arith.constant 6 : index
    %c0_179 = arith.constant 0 : index
    %156 = vector.load %arg11[%c0_177, %c6_178, %c0_179] : memref<2x14x64xf32, #tpu.memory_space<vmem>>, vector<1x8x64xf32>
    %157 = vector.shape_cast %156 : vector<1x8x64xf32> to vector<8x64xf32>
    %158 = tpu.concatenate %145, %147, %149, %151, %153, %155, %157 in 1 : vector<8x64xf32>, vector<8x64xf32>, vector<8x64xf32>, vector<8x64xf32>, vector<8x64xf32>, vector<8x64xf32>, vector<8x64xf32> -> vector<8x448xf32>
    %c0_180 = arith.constant 0 : index
    %c0_181 = arith.constant 0 : index
    %159 = vector.load %arg3[%c0_180, %c0_181] : memref<448x32xf32, #tpu.memory_space<vmem>>, vector<448x32xf32>
    %cst_182 = arith.constant dense<0.000000e+00> : vector<8x32xf32>
    %160 = tpu.matmul %158, %159, %cst_182 {dimension_numbers = #tpu.dot_dimension_numbers<[1], [0], [0], [1], [0, 0, 1, 1], [], []>} : vector<8x448xf32>, vector<448x32xf32>, vector<8x32xf32> -> vector<8x32xf32>
    %c0_183 = arith.constant 0 : index
    %c0_184 = arith.constant 0 : index
    %161 = vector.load %arg4[%c0_183, %c0_184] : memref<1x32xf32, #tpu.memory_space<vmem>>, vector<1x32xf32>
    %162 = vector.broadcast %161 : vector<1x32xf32> to vector<8x32xf32>
    %163 = arith.addf %160, %162 : vector<8x32xf32>
    %cst_185 = arith.constant 0.000000e+00 : f32
    %164 = vector.broadcast %cst_185 : f32 to vector<8x32xf32>
    %165 = arith.maximumf %163, %164 : vector<8x32xf32>
    %c0_186 = arith.constant 0 : index
    %c1_187 = arith.constant 1 : index
    %c0_188 = arith.constant 0 : index
    %166 = vector.load %arg12[%c0_186, %c1_187, %c0_188] : memref<2x10x32xf32, #tpu.memory_space<vmem>>, vector<1x8x32xf32>
    %167 = vector.shape_cast %166 : vector<1x8x32xf32> to vector<8x32xf32>
    %168 = vector.shape_cast %165 : vector<8x32xf32> to vector<1x8x32xf32>
    tpu.vector_store %arg12[%c0_186, %c1_187, %c0_188], %168 {strides = array<i32>} : memref<2x10x32xf32, #tpu.memory_space<vmem>>, vector<1x8x32xf32>,
    %c0_189 = arith.constant 0 : index
    %c0_190 = arith.constant 0 : index
    %c0_191 = arith.constant 0 : index
    %169 = vector.load %arg12[%c0_189, %c0_190, %c0_191] : memref<2x10x32xf32, #tpu.memory_space<vmem>>, vector<1x8x32xf32>
    %170 = vector.shape_cast %169 : vector<1x8x32xf32> to vector<8x32xf32>
    %c0_192 = arith.constant 0 : index
    %c1_193 = arith.constant 1 : index
    %c0_194 = arith.constant 0 : index
    %171 = vector.load %arg12[%c0_192, %c1_193, %c0_194] : memref<2x10x32xf32, #tpu.memory_space<vmem>>, vector<1x8x32xf32>
    %172 = vector.shape_cast %171 : vector<1x8x32xf32> to vector<8x32xf32>
    %c0_195 = arith.constant 0 : index
    %c2_196 = arith.constant 2 : index
    %c0_197 = arith.constant 0 : index
    %173 = vector.load %arg12[%c0_195, %c2_196, %c0_197] : memref<2x10x32xf32, #tpu.memory_space<vmem>>, vector<1x8x32xf32>
    %174 = vector.shape_cast %173 : vector<1x8x32xf32> to vector<8x32xf32>
    %175 = tpu.concatenate %170, %172, %174 in 1 : vector<8x32xf32>, vector<8x32xf32>, vector<8x32xf32> -> vector<8x96xf32>
    %c0_198 = arith.constant 0 : index
    %c0_199 = arith.constant 0 : index
    %176 = vector.load %arg5[%c0_198, %c0_199] : memref<96x1xf32, #tpu.memory_space<vmem>>, vector<96x1xf32>
    %cst_200 = arith.constant dense<0.000000e+00> : vector<8x1xf32>
    %177 = tpu.matmul %175, %176, %cst_200 {dimension_numbers = #tpu.dot_dimension_numbers<[1], [0], [0], [1], [0, 0, 1, 1], [], []>} : vector<8x96xf32>, vector<96x1xf32>, vector<8x1xf32> -> vector<8x1xf32>
    %c0_201 = arith.constant 0 : index
    %c0_202 = arith.constant 0 : index
    %178 = vector.load %arg6[%c0_201, %c0_202] : memref<1x1xf32, #tpu.memory_space<vmem>>, vector<1x1xf32>
    %179 = vector.broadcast %178 : vector<1x1xf32> to vector<8x1xf32>
    %180 = arith.addf %177, %179 : vector<8x1xf32>
    %c0_203 = arith.constant 0 : index
    %c0_204 = arith.constant 0 : index
    %c0_205 = arith.constant 0 : index
    %181 = vector.load %arg8[%c0_203, %c0_204, %c0_205] : memref<2x8x1xf32, #tpu.memory_space<vmem>>, vector<1x8x1xf32>
    %182 = vector.shape_cast %181 : vector<1x8x1xf32> to vector<8x1xf32>
    %183 = vector.shape_cast %180 : vector<8x1xf32> to vector<1x8x1xf32>
    tpu.vector_store %arg8[%c0_203, %c0_204, %c0_205], %183 {strides = array<i32>} : memref<2x8x1xf32, #tpu.memory_space<vmem>>, vector<1x8x1xf32>,
    %cst_206 = arith.constant 4.000000e+00 : f32
    %184 = vector.broadcast %cst_206 : f32 to vector<8x1xf32>
    %185 = arith.mulf %180, %184 : vector<8x1xf32>
    %cst_207 = arith.constant 5.000000e-01 : f32
    %186 = vector.broadcast %cst_207 : f32 to vector<8x1xf32>
    %187 = arith.mulf %186, %185 : vector<8x1xf32>
    %188 = math.tanh %187 : vector<8x1xf32>
    %cst_208 = arith.constant 1.000000e+00 : f32
    %189 = vector.broadcast %cst_208 : f32 to vector<8x1xf32>
    %190 = arith.addf %188, %189 : vector<8x1xf32>
    %cst_209 = arith.constant 5.000000e-01 : f32
    %191 = vector.broadcast %cst_209 : f32 to vector<8x1xf32>
    %192 = arith.mulf %191, %190 : vector<8x1xf32>
    %193 = math.roundeven %192 : vector<8x1xf32>
    %194 = vector.extract_strided_slice %17 {offsets = [0, 0], sizes = [8, 1], strides = [1, 1]} : vector<8x2xf32> to vector<8x1xf32>
    %195 = vector.extract_strided_slice %35 {offsets = [0, 0], sizes = [8, 1], strides = [1, 1]} : vector<8x2xf32> to vector<8x1xf32>
    %c0_210 = arith.constant 0 : index
    %c0_211 = arith.constant 0 : index
    %c0_212 = arith.constant 0 : index
    %196 = vector.load %arg7[%c0_210, %c0_211, %c0_212] : memref<2x8x1xf32, #tpu.memory_space<vmem>>, vector<1x8x1xf32>
    %197 = vector.shape_cast %196 : vector<1x8x1xf32> to vector<8x1xf32>
    %198 = vector.shape_cast %194 : vector<8x1xf32> to vector<1x8x1xf32>
    tpu.vector_store %arg7[%c0_210, %c0_211, %c0_212], %198 {strides = array<i32>} : memref<2x8x1xf32, #tpu.memory_space<vmem>>, vector<1x8x1xf32>,
    %c0_213 = arith.constant 0 : index
    %c0_214 = arith.constant 0 : index
    %c0_215 = arith.constant 0 : index
    %199 = vector.load %arg9[%c0_213, %c0_214, %c0_215] : memref<2x8x1xf32, #tpu.memory_space<vmem>>, vector<1x8x1xf32>
    %200 = vector.shape_cast %199 : vector<1x8x1xf32> to vector<8x1xf32>
    %201 = vector.shape_cast %195 : vector<8x1xf32> to vector<1x8x1xf32>
    tpu.vector_store %arg9[%c0_213, %c0_214, %c0_215], %201 {strides = array<i32>} : memref<2x8x1xf32, #tpu.memory_space<vmem>>, vector<1x8x1xf32>,
    %202 = arith.mulf %192, %193 : vector<8x1xf32>
    %203 = arith.mulf %202, %194 : vector<8x1xf32>
    %cst_216 = arith.constant 1.000000e+00 : f32
    %204 = vector.broadcast %cst_216 : f32 to vector<8x1xf32>
    %205 = arith.subf %204, %193 : vector<8x1xf32>
    %206 = arith.mulf %205, %195 : vector<8x1xf32>
    %207 = arith.addf %203, %206 : vector<8x1xf32>
    %c0_217 = arith.constant 0 : index
    %c0_218 = arith.constant 0 : index
    %c0_219 = arith.constant 0 : index
    %208 = vector.load %arg10[%c0_217, %c0_218, %c0_219] : memref<2x8x1xf32, #tpu.memory_space<vmem>>, vector<1x8x1xf32>
    %209 = vector.shape_cast %208 : vector<1x8x1xf32> to vector<8x1xf32>
    %210 = vector.shape_cast %207 : vector<8x1xf32> to vector<1x8x1xf32>
    tpu.vector_store %arg10[%c0_217, %c0_218, %c0_219], %210 {strides = array<i32>} : memref<2x8x1xf32, #tpu.memory_space<vmem>>, vector<1x8x1xf32>,
    %c1_220 = arith.constant 1 : index
    %c0_221 = arith.constant 0 : index
    %c0_222 = arith.constant 0 : index
    %211 = vector.load %arg11[%c1_220, %c0_221, %c0_222] : memref<2x14x64xf32, #tpu.memory_space<vmem>>, vector<1x8x64xf32>
    %212 = vector.shape_cast %211 : vector<1x8x64xf32> to vector<8x64xf32>
    %c1_223 = arith.constant 1 : index
    %c1_224 = arith.constant 1 : index
    %c0_225 = arith.constant 0 : index
    %213 = vector.load %arg11[%c1_223, %c1_224, %c0_225] : memref<2x14x64xf32, #tpu.memory_space<vmem>>, vector<1x8x64xf32>
    %214 = vector.shape_cast %213 : vector<1x8x64xf32> to vector<8x64xf32>
    %c1_226 = arith.constant 1 : index
    %c2_227 = arith.constant 2 : index
    %c0_228 = arith.constant 0 : index
    %215 = vector.load %arg11[%c1_226, %c2_227, %c0_228] : memref<2x14x64xf32, #tpu.memory_space<vmem>>, vector<1x8x64xf32>
    %216 = vector.shape_cast %215 : vector<1x8x64xf32> to vector<8x64xf32>
    %c1_229 = arith.constant 1 : index
    %c3_230 = arith.constant 3 : index
    %c0_231 = arith.constant 0 : index
    %217 = vector.load %arg11[%c1_229, %c3_230, %c0_231] : memref<2x14x64xf32, #tpu.memory_space<vmem>>, vector<1x8x64xf32>
    %218 = vector.shape_cast %217 : vector<1x8x64xf32> to vector<8x64xf32>
    %c1_232 = arith.constant 1 : index
    %c4_233 = arith.constant 4 : index
    %c0_234 = arith.constant 0 : index
    %219 = vector.load %arg11[%c1_232, %c4_233, %c0_234] : memref<2x14x64xf32, #tpu.memory_space<vmem>>, vector<1x8x64xf32>
    %220 = vector.shape_cast %219 : vector<1x8x64xf32> to vector<8x64xf32>
    %c1_235 = arith.constant 1 : index
    %c5_236 = arith.constant 5 : index
    %c0_237 = arith.constant 0 : index
    %221 = vector.load %arg11[%c1_235, %c5_236, %c0_237] : memref<2x14x64xf32, #tpu.memory_space<vmem>>, vector<1x8x64xf32>
    %222 = vector.shape_cast %221 : vector<1x8x64xf32> to vector<8x64xf32>
    %c1_238 = arith.constant 1 : index
    %c6_239 = arith.constant 6 : index
    %c0_240 = arith.constant 0 : index
    %223 = vector.load %arg11[%c1_238, %c6_239, %c0_240] : memref<2x14x64xf32, #tpu.memory_space<vmem>>, vector<1x8x64xf32>
    %224 = vector.shape_cast %223 : vector<1x8x64xf32> to vector<8x64xf32>
    %225 = tpu.concatenate %212, %214, %216, %218, %220, %222, %224 in 1 : vector<8x64xf32>, vector<8x64xf32>, vector<8x64xf32>, vector<8x64xf32>, vector<8x64xf32>, vector<8x64xf32>, vector<8x64xf32> -> vector<8x448xf32>
    %c0_241 = arith.constant 0 : index
    %c0_242 = arith.constant 0 : index
    %226 = vector.load %arg3[%c0_241, %c0_242] : memref<448x32xf32, #tpu.memory_space<vmem>>, vector<448x32xf32>
    %cst_243 = arith.constant dense<0.000000e+00> : vector<8x32xf32>
    %227 = tpu.matmul %225, %226, %cst_243 {dimension_numbers = #tpu.dot_dimension_numbers<[1], [0], [0], [1], [0, 0, 1, 1], [], []>} : vector<8x448xf32>, vector<448x32xf32>, vector<8x32xf32> -> vector<8x32xf32>
    %c0_244 = arith.constant 0 : index
    %c0_245 = arith.constant 0 : index
    %228 = vector.load %arg4[%c0_244, %c0_245] : memref<1x32xf32, #tpu.memory_space<vmem>>, vector<1x32xf32>
    %229 = vector.broadcast %228 : vector<1x32xf32> to vector<8x32xf32>
    %230 = arith.addf %227, %229 : vector<8x32xf32>
    %cst_246 = arith.constant 0.000000e+00 : f32
    %231 = vector.broadcast %cst_246 : f32 to vector<8x32xf32>
    %232 = arith.maximumf %230, %231 : vector<8x32xf32>
    %c1_247 = arith.constant 1 : index
    %c1_248 = arith.constant 1 : index
    %c0_249 = arith.constant 0 : index
    %233 = vector.load %arg12[%c1_247, %c1_248, %c0_249] : memref<2x10x32xf32, #tpu.memory_space<vmem>>, vector<1x8x32xf32>
    %234 = vector.shape_cast %233 : vector<1x8x32xf32> to vector<8x32xf32>
    %235 = vector.shape_cast %232 : vector<8x32xf32> to vector<1x8x32xf32>
    tpu.vector_store %arg12[%c1_247, %c1_248, %c0_249], %235 {strides = array<i32>} : memref<2x10x32xf32, #tpu.memory_space<vmem>>, vector<1x8x32xf32>,
    %c1_250 = arith.constant 1 : index
    %c0_251 = arith.constant 0 : index
    %c0_252 = arith.constant 0 : index
    %236 = vector.load %arg12[%c1_250, %c0_251, %c0_252] : memref<2x10x32xf32, #tpu.memory_space<vmem>>, vector<1x8x32xf32>
    %237 = vector.shape_cast %236 : vector<1x8x32xf32> to vector<8x32xf32>
    %c1_253 = arith.constant 1 : index
    %c1_254 = arith.constant 1 : index
    %c0_255 = arith.constant 0 : index
    %238 = vector.load %arg12[%c1_253, %c1_254, %c0_255] : memref<2x10x32xf32, #tpu.memory_space<vmem>>, vector<1x8x32xf32>
    %239 = vector.shape_cast %238 : vector<1x8x32xf32> to vector<8x32xf32>
    %c1_256 = arith.constant 1 : index
    %c2_257 = arith.constant 2 : index
    %c0_258 = arith.constant 0 : index
    %240 = vector.load %arg12[%c1_256, %c2_257, %c0_258] : memref<2x10x32xf32, #tpu.memory_space<vmem>>, vector<1x8x32xf32>
    %241 = vector.shape_cast %240 : vector<1x8x32xf32> to vector<8x32xf32>
    %242 = tpu.concatenate %237, %239, %241 in 1 : vector<8x32xf32>, vector<8x32xf32>, vector<8x32xf32> -> vector<8x96xf32>
    %c0_259 = arith.constant 0 : index
    %c0_260 = arith.constant 0 : index
    %243 = vector.load %arg5[%c0_259, %c0_260] : memref<96x1xf32, #tpu.memory_space<vmem>>, vector<96x1xf32>
    %cst_261 = arith.constant dense<0.000000e+00> : vector<8x1xf32>
    %244 = tpu.matmul %242, %243, %cst_261 {dimension_numbers = #tpu.dot_dimension_numbers<[1], [0], [0], [1], [0, 0, 1, 1], [], []>} : vector<8x96xf32>, vector<96x1xf32>, vector<8x1xf32> -> vector<8x1xf32>
    %c0_262 = arith.constant 0 : index
    %c0_263 = arith.constant 0 : index
    %245 = vector.load %arg6[%c0_262, %c0_263] : memref<1x1xf32, #tpu.memory_space<vmem>>, vector<1x1xf32>
    %246 = vector.broadcast %245 : vector<1x1xf32> to vector<8x1xf32>
    %247 = arith.addf %244, %246 : vector<8x1xf32>
    %c1_264 = arith.constant 1 : index
    %c0_265 = arith.constant 0 : index
    %c0_266 = arith.constant 0 : index
    %248 = vector.load %arg8[%c1_264, %c0_265, %c0_266] : memref<2x8x1xf32, #tpu.memory_space<vmem>>, vector<1x8x1xf32>
    %249 = vector.shape_cast %248 : vector<1x8x1xf32> to vector<8x1xf32>
    %250 = vector.shape_cast %247 : vector<8x1xf32> to vector<1x8x1xf32>
    tpu.vector_store %arg8[%c1_264, %c0_265, %c0_266], %250 {strides = array<i32>} : memref<2x8x1xf32, #tpu.memory_space<vmem>>, vector<1x8x1xf32>,
    %cst_267 = arith.constant 4.000000e+00 : f32
    %251 = vector.broadcast %cst_267 : f32 to vector<8x1xf32>
    %252 = arith.mulf %247, %251 : vector<8x1xf32>
    %cst_268 = arith.constant 5.000000e-01 : f32
    %253 = vector.broadcast %cst_268 : f32 to vector<8x1xf32>
    %254 = arith.mulf %253, %252 : vector<8x1xf32>
    %255 = math.tanh %254 : vector<8x1xf32>
    %cst_269 = arith.constant 1.000000e+00 : f32
    %256 = vector.broadcast %cst_269 : f32 to vector<8x1xf32>
    %257 = arith.addf %255, %256 : vector<8x1xf32>
    %cst_270 = arith.constant 5.000000e-01 : f32
    %258 = vector.broadcast %cst_270 : f32 to vector<8x1xf32>
    %259 = arith.mulf %258, %257 : vector<8x1xf32>
    %260 = math.roundeven %259 : vector<8x1xf32>
    %261 = vector.extract_strided_slice %17 {offsets = [0, 1], sizes = [8, 1], strides = [1, 1]} : vector<8x2xf32> to vector<8x1xf32>
    %262 = vector.extract_strided_slice %35 {offsets = [0, 1], sizes = [8, 1], strides = [1, 1]} : vector<8x2xf32> to vector<8x1xf32>
    %c1_271 = arith.constant 1 : index
    %c0_272 = arith.constant 0 : index
    %c0_273 = arith.constant 0 : index
    %263 = vector.load %arg7[%c1_271, %c0_272, %c0_273] : memref<2x8x1xf32, #tpu.memory_space<vmem>>, vector<1x8x1xf32>
    %264 = vector.shape_cast %263 : vector<1x8x1xf32> to vector<8x1xf32>
    %265 = vector.shape_cast %261 : vector<8x1xf32> to vector<1x8x1xf32>
    tpu.vector_store %arg7[%c1_271, %c0_272, %c0_273], %265 {strides = array<i32>} : memref<2x8x1xf32, #tpu.memory_space<vmem>>, vector<1x8x1xf32>,
    %c1_274 = arith.constant 1 : index
    %c0_275 = arith.constant 0 : index
    %c0_276 = arith.constant 0 : index
    %266 = vector.load %arg9[%c1_274, %c0_275, %c0_276] : memref<2x8x1xf32, #tpu.memory_space<vmem>>, vector<1x8x1xf32>
    %267 = vector.shape_cast %266 : vector<1x8x1xf32> to vector<8x1xf32>
    %268 = vector.shape_cast %262 : vector<8x1xf32> to vector<1x8x1xf32>
    tpu.vector_store %arg9[%c1_274, %c0_275, %c0_276], %268 {strides = array<i32>} : memref<2x8x1xf32, #tpu.memory_space<vmem>>, vector<1x8x1xf32>,
    %269 = arith.mulf %259, %260 : vector<8x1xf32>
    %270 = arith.mulf %269, %261 : vector<8x1xf32>
    %cst_277 = arith.constant 1.000000e+00 : f32
    %271 = vector.broadcast %cst_277 : f32 to vector<8x1xf32>
    %272 = arith.subf %271, %260 : vector<8x1xf32>
    %273 = arith.mulf %272, %262 : vector<8x1xf32>
    %274 = arith.addf %270, %273 : vector<8x1xf32>
    %c1_278 = arith.constant 1 : index
    %c0_279 = arith.constant 0 : index
    %c0_280 = arith.constant 0 : index
    %275 = vector.load %arg10[%c1_278, %c0_279, %c0_280] : memref<2x8x1xf32, #tpu.memory_space<vmem>>, vector<1x8x1xf32>
    %276 = vector.shape_cast %275 : vector<1x8x1xf32> to vector<8x1xf32>
    %277 = vector.shape_cast %274 : vector<8x1xf32> to vector<1x8x1xf32>
    tpu.vector_store %arg10[%c1_278, %c0_279, %c0_280], %277 {strides = array<i32>} : memref<2x8x1xf32, #tpu.memory_space<vmem>>, vector<1x8x1xf32>,
    return
  }
}

</mosaic_0001>

<bundles_post_ra>
// kernel: decoder_lstm_forward.2
= control target key start
LH: loop header
LB: loop body
LE: loop exit
PB: predicated region body
PF: predicated region fallthrough
CT: control target
= control target key end

     0   :  { %s982_s21 = smov 0   ;;  %s1090_s0 = inlined_call_operand.vmem [shape: f32[3,16,2], index: 0, kind: input, shape index: {}]   ;;  %s1091_s1 = inlined_call_operand.vmem [shape: f32[3,2,256], index: 1, kind: input, shape index: {}]   ;;  %s1092_s2 = inlined_call_operand.vmem [shape: f32[3,32,256], index: 2, kind: input, shape index: {}]   ;;  %s1093_s3 = inlined_call_operand.vmem [shape: f32[3,4,128], index: 3, kind: input, shape index: {}]   ;;  %s1094_s4 = inlined_call_operand.vmem [shape: f32[3,4,32], index: 4, kind: input, shape index: {}]   ;;  %s1095_s5 = inlined_call_operand.vmem [shape: f32[3,4,32], index: 5, kind: input, shape index: {}]   ;;  %s1096_s6 = inlined_call_operand.vmem [shape: f32[3,2,8,2,32], index: 6, kind: output, shape index: {}]  }
   0x1 LB: > { %s813_s22 = sadd.s32 4294967295, %s927_s21   ;;  %p817_p0 = scmp.ge.s32.totalorder %s927_s21, 1  ;;  %s927_s21 = sphi %s982_s21, %s16_s21  }
   0x2   : > { %p259_p1 = scmp.lt.s32.totalorder %s927_s21, 4 }
   0x4   : > { %p260_p2 = pnand %p817_p0, %p259_p1 }
   0x5   : > { %p311_p3 = scmp.lt.s32.totalorder (!%p260_p2), %s813_s22, 2  ;;  %v941_v0 = vmov (!%p260_p2), 0.0   ;;  %vm362_vm0 = vcmask (!%p260_p2), 1041408   ;;  %vm355_vm1 = vcmask (!%p260_p2), 15360   ;;  %v942_v16 = vmov (!%p260_p2), 1983009808  }
   0x6   : > { %263 = sbr.rel (%p260_p2) target bundleno = 961 (0x3c1), region = 44  ;;  %431 = vmatprep.mubr.f32.mxu0 (!%p260_p2), %v941_v0  ;;  %437 = vmatprep.mubr.f32.mxu1 (!%p260_p2), %v941_v0  ;;  %v448_v17 = vunpack.c.l.s4 (!%p260_p2), %v942_v16  ;;  %v450_v18 = vlaneseq (!%p260_p2) }
   0x8   : > { %v449_v19 = vunpack.c.0.s8 (!%p260_p2), %v448_v17  ;;  %v451_v20 = vshrl.u32 (!%p260_p2), %v450_v18, 7 }
   0xa   : > { %v1041_v23 = vsub.s32 (!%p260_p2), %v449_v19, %v451_v20 }
   0xd   : > { %s1098_s22 = smov (!%p311_p3, %s813_s22), 2 }
   0xe   : > { %s849_s23 = sshll.u32 %s1098_s22, 2  ;;  %s850_s24 = sshll.u32 %s1098_s22, 6 }
   0xf   : > { %s320_s27 = scalar_lea.vmem %s1091_s1, %s849_s23  ;;  %s325_s30 = scalar_lea.vmem %s1092_s2, %s850_s24 }
  0x10   : > { %s329_s9 = scalar_lea.vmem %s1093_s3, %s849_s23  ;;  %s333_s12 = scalar_lea.vmem %s1094_s4, %s849_s23  ;;  %v829_v1 = vld.sshfl [vmem:[%s320_s27] sm:$0x33 pattern:$0x76325410]  ;;  %v1008_v3 = vld [vmem:[%s325_s30 + $0x8] sm:$0xff]  ;;  %v1014_v5 = vld [vmem:[%s325_s30 + $0x10] sm:$0xff] }
  0x11   : > { %v1006_v2 = vld [vmem:[%s325_s30] sm:$0xff]  ;;  %s337_s15 = scalar_lea.vmem %s1095_s5, %s849_s23  ;;  %s851_s16 = sshll.u32 %s1098_s22, 5  ;;  %v354_v4 = vcombine.high %v829_v1, %v829_v1  ;;  %v1016_v6 = vld [vmem:[%s325_s30 + $0x18] sm:$0xff]  ;;  %v1025_v8 = vld [vmem:[%s325_s30 + $0x28] sm:$0xff] }
  0x12   : > { %v1018_v7 = vld [vmem:[%s325_s30 + $0x20] sm:$0xff]  ;;  %s1023_s19 = scalar_lea.vmem %s1096_s6, %s851_s16  ;;  %v1027_v9 = vld [vmem:[%s325_s30 + $0x30] sm:$0xff]  ;;  %v1029_v10 = vld [vmem:[%s325_s30 + $0x38] sm:$0xff]  ;;  %s848_s20 = sshll.u32 %s1098_s22, 4 }
  0x13   : > { %830 = vmatprep.subr.msk.mxu0 %vm362_vm0, %v354_v4  ;;  %v1033_v11 = vld [vmem:[%s329_s9] sm:$0xf]  ;;  %862 = vmatprep.subr.msk.mxu1 %vm362_vm0, %v354_v4  ;;  %s315_s25 = scalar_lea.vmem %s1090_s0, %s848_s20  ;;  %s1051_s22 = smov 0  }
  0x14   : > { %v516_v12 = vld [vmem:[%s333_s12] sm:$0xf]   ;;  %831 = vmatpush1.msk.msra.mxu0 %vm362_vm0, %v829_v1  ;;  %863 = vmatpush1.msk.msra.mxu1 %vm362_vm0, %v829_v1  ;;  %v344_v15 = vld [vmem:[%s315_s25 + $0x8] sm:$0xff] }
  0x15   : > { %v517_v13 = vld [vmem:[%s337_s15] sm:$0xf]   ;;  %833 = vmatmul.mubr.msk.f32.vlgmr.msra.gmra.mrb[0].mxu1 %vm355_vm1, %v344_v15 }
  0x16   : > { %v343_v14 = vld [vmem:[%s315_s25] sm:$0xff] }
  0x17   : > { %832 = vmatmul.mubr.msk.f32.vlgmr.msra.gmra.mrb[0].mxu0 %vm355_vm1, %v343_v14 }
  0xe8   : > { %v439_v22 = vpop.f32.mrb[0].mxu1 }
  0xe9   : > { %v441_v25 = vpop.f32.mrb[1].mxu1 }
  0xea   : > { %v433_v21 = vpop.f32.mrb[0].mxu0  ;;  %v477_v28 = vcombine.low %v439_v22, %v441_v25  ;;  %v492_v29 = vcombine.high %v439_v22, %v441_v25 }
  0xeb   : > { %v435_v24 = vpop.f32.mrb[1].mxu0 }
  0xec   : > { %v446_v26 = vcombine.low %v433_v21, %v435_v24  ;;  %v460_v27 = vcombine.high %v433_v21, %v435_v24  ;;  %v484_v32 = vrot.slane %v477_v28, %v1041_v23  ;;  %836 = vst.sshfl [vmem:[#allocation2 + $0x10] sm:$0x33 pattern:$0x76325410] %v477_v28  ;;  %v499_v33 = vrot.slane %v492_v29, %v1041_v23 }
  0xed   : > { %837 = vst.sshfl [vmem:[#allocation2 + $0x18] sm:$0x33 pattern:$0x76325410] %v492_v29 }
  0xee   : > { %v453_v30 = vrot.slane %v446_v26, %v1041_v23  ;;  %834 = vst.sshfl [vmem:[#allocation2] sm:$0x33 pattern:$0x76325410] %v446_v26  ;;  %v467_v31 = vrot.slane %v460_v27, %v1041_v23  ;;  %v488_v36 = vcombine.high %v484_v32, %v484_v32  ;;  %v503_v37 = vcombine.high %v499_v33, %v499_v33 }
  0xef   : > { %835 = vst.sshfl [vmem:[#allocation2 + $0x8] sm:$0x33 pattern:$0x76325410] %v460_v27 }
  0xf0   : > { %v456_v34 = vcombine.high %v453_v30, %v453_v30  ;;  %v471_v35 = vcombine.high %v467_v31, %v467_v31  ;;  %491 = vst [vmem:[#allocation2 + $0x14] sm:$0xf] %v488_v36  ;;  %506 = vst [vmem:[#allocation2 + $0x1c] sm:$0xf] %v503_v37 }
  0xf2   : > { %459 = vst [vmem:[#allocation2 + $0x4] sm:$0xf] %v456_v34  ;;  %474 = vst [vmem:[#allocation2 + $0xc] sm:$0xf] %v471_v35 }
  0xf3 LB: >> { %v854_v38 = vpack.c.bf16 %v1016_v6, %v1008_v3  ;;  %v856_v39 = vpack.c.bf16 %v1014_v5, %v1006_v2  ;;  %v858_v40 = vpack.c.bf16 %v1029_v10, %v1025_v8  ;;  %v943_v41 = vmov 0.0   ;;  %s526_s26 = ssub.s32 7, %s939_s22  ;;  %s852_s29 = sshll.u32 %s939_s22, 2  ;;  %s939_s22 = sphi %s1051_s22, %s523_s22   ;;  %v935_v12 = vphi %v516_v12, %v665_v12   ;;  %v931_v13 = vphi %v517_v13, %v676_v13  }
  0xf4   : >> { %628 = vmatprep.mubr.f32.mxu0 %v943_v41  ;;  %v860_v42 = vpack.c.bf16 %v1027_v9, %v1018_v7  ;;  %s853_s27 = sshll.u32 %s526_s26, 2  ;;  %vm560_vm2 = vcmask 261120   ;;  %s529_s30 = scalar_lea.vmem [#allocation2], %s852_s29  ;;  %vm668_vm3 = vcmask 254976   ;;  %vm672_vm4 = vcmask 257026  }
  0xf5   : >> { %855 = vmatprep.subr.bf16.mxu0 %v854_v38  ;;  %s533_s28 = scalar_lea.vmem [#allocation2], %s853_s27  ;;  %s944_s7 = smov 64  }
  0xf6   : >> { %857 = vmatpush1.bf16.msra.mxu0 %v856_v39  ;;  %s945_s8 = smov 32   ;;  %s946_s9 = smov 96  }
  0xf7   : >> { %859 = vmatprep.subr.bf16.mxu0 %v858_v40  ;;  %s838_s10 = sshll.u32 %s939_s22, 1  ;;  %s844_s11 = sshll.u32 %s526_s26, 1 }
  0xf8   : >> { %s667_s12 = scalar_lea.vmem %s1023_s19, %s838_s10  ;;  %s746_s13 = scalar_lea.vmem %s1023_s19, %s844_s11 }
  0xf9   : >> { %v902_v43 = vld [vmem:[%s533_s28] ss:$0 sps:$4 sm:$0xff]   ;;  %s523_s22 = sadd.s32 1, %s939_s22  }
  0xfa   : >> { %861 = vmatpush1.bf16.msra.mxu0 %v860_v42  ;;  %v554_v44 = vrot.slane %v902_v43, %v1041_v23  ;;  %v842_v45 = vld.sshfl [vmem:[%s529_s30] sm:$0x33 pattern:$0x76325410]  ;;  %p520_p4 = scmp.ge.s32.totalorder %s523_s22, 8  }
  0xfb   : >> { %v543_v46 = vcombine.high %v842_v45, %v842_v45 }
  0xfc   : >> { %v555_v47 = vcombine.high %v554_v44, %v554_v44  ;;  %v558_v48 = vsel %vm362_vm0, %v842_v45, %v554_v44 }
  0xfd   : >> { %843 = vmatmul.mubr.msk.f32.vlgmr.msra.gmra.mrb[0].mxu0 %vm560_vm2, %v935_v12 }
  0xfe   : >> { %v559_v49 = vsel %vm362_vm0, %v543_v46, %v555_v47 }
 0x1d0   : >> { %v630_v50 = vpop.f32.mrb[0].mxu0 }
 0x1d1   : >> { %v631_v51 = vadd.f32 %v630_v50, %v558_v48  ;;  %v632_v52 = vpop.f32.mrb[1].mxu0 }
 0x1d2   : >> { %v633_v53 = vadd.f32 %v632_v52, %v559_v49 }
 0x1d4   : >> { %v635_v54 = vsel %vm362_vm0, %v631_v51, %v633_v53 }
 0x1d5   : >> { %v636_v55 = vadd.f32 %v635_v54, %v1033_v11 }
 0x1d7   : >> { %903 = vtanh.f32 %v636_v55  ;;  %v637_v57 = vmul.f32 0.5, %v636_v55 }
 0x1d9   : >> { %905 = vtanh.f32 %v637_v57 }
 0x1e1   : >> { %v904_v56 = vpop.eup %903 }
 0x1e2   : >> { %648 = vrot.lane.b32.xlu0 %v904_v56, %s944_s7 }
 0x1e3   : >> { %v906_v58 = vpop.eup %905 }
 0x1e4   : >> { %v639_v59 = vadd.f32 1.0, %v906_v58 }
 0x1e6   : >> { %643 = vrot.lane.b32.xlu0 %v931_v13, %s945_s8  ;;  %v640_v60 = vmul.f32 0.5, %v639_v59 }
 0x254   : >> { %v649_v61 = vpop.permute.xlu0 %648 }
 0x255   : >> { %v651_v62 = vmul.f32 %v649_v61, %v640_v60 }
 0x257   : >> { %653 = vrot.lane.b32.xlu1 %v651_v62, %s945_s8 }
 0x258   : >> { %v644_v63 = vpop.permute.xlu0 %643 }
 0x259   : >> { %v646_v0 = vmul.f32 %v644_v63, %v640_v60 }
 0x2c9   : >> { %v654_v1 = vpop.permute.xlu1 %653 }
 0x2ca   : >> { %v656_v4 = vadd.f32 %v654_v1, %v646_v0 }
 0x2cc   : >> { %907 = vtanh.f32 %v656_v4 }
 0x2d6   : >> { %v908_v12 = vpop.eup %907 }
 0x2d7   : >> { %659 = vrot.lane.b32.xlu1 %v908_v12, %s944_s7 }
 0x2db   : >> { %675 = vrot.lane.b32.xlu1 %v656_v4, %s946_s9 }
 0x349   : >> { %v660_v13 = vpop.permute.xlu1 %659 }
 0x34a   : >> { %v662_v14 = vmul.f32 %v660_v13, %v640_v60 }
 0x34c   : >> { %664 = vrot.lane.b32.xlu0 %v662_v14, %s945_s8 }
 0x34d   : >> { %v676_v13 = vpop.permute.xlu1 %675  }
 0x3ba   : > { %522 = sbr.rel (!%p520_p4) target bundleno = 243 (0xf3), region = 107 }
 0x3be   : >> { %v665_v12 = vpop.permute.xlu0 %664  }
 0x3bf   : >> { %669 = vst.msk [vmem:[%s667_s12] sm:$0x3] %vm668_vm3, %v665_v12 }
 0x3c0   : >> { %845 = vst.msk [vmem:[%s746_s13 + $0xe] sm:$0xc] %vm672_vm4, %v665_v12 }
 0x3c1 PF: > { %s16_s21 = sadd.s32 1, %s927_s21  }
 0x3c2   : > { %p13_p5 = scmp.ge.s32.totalorder %s16_s21, 5  }
 0x3c4   :  { %15 = sbr.rel (!%p13_p5) target bundleno = 1 (0x1), region = 118 }

// kernel: decoder_lstm_forward.3
= control target key start
LH: loop header
LB: loop body
LE: loop exit
PB: predicated region body
PF: predicated region fallthrough
CT: control target
= control target key end

     0   :  { %vm260_vm0 = vcmask 523264   ;;  %vm266_vm1 = vcmask 261120   ;;  %v1594_v2 = vmov 0.0   ;;  %s1595_s17 = smov 32   ;;  %vm262_vm2 = vcmask 521216   ;;  %s1599_s22 = smov 96   ;;  %s2455_s0 = inlined_call_operand.vmem [shape: f32[3,2,8,2,32], index: 0, kind: input, shape index: {}]   ;;  %s2456_s3 = inlined_call_operand.vmem [shape: f32[448,32], index: 3, kind: input, shape index: {}]   ;;  %s2457_s5 = inlined_call_operand.vmem [shape: f32[96,1], index: 5, kind: input, shape index: {}]   ;;  %s2458_s4 = inlined_call_operand.vmem [shape: f32[1,32], index: 4, kind: input, shape index: {}]   ;;  %s2459_s6 = inlined_call_operand.<no memory space> [shape: f32[1,1], index: 6, kind: input, shape index: {}]   ;;  %s2460_s8 = inlined_call_operand.vmem [shape: f32[2,8,1], index: 8, kind: output, shape index: {1}]   ;;  %s2461_s1 = inlined_call_operand.vmem [shape: f32[2,64], index: 1, kind: input, shape index: {}]   ;;  %s2462_s2 = inlined_call_operand.vmem [shape: f32[1,2], index: 2, kind: input, shape index: {}]   ;;  %s2463_s7 = inlined_call_operand.vmem [shape: f32[2,8,1], index: 7, kind: output, shape index: {0}]   ;;  %s2464_s9 = inlined_call_operand.vmem [shape: f32[2,8,1], index: 9, kind: output, shape index: {2}]   ;;  %s2465_s10 = inlined_call_operand.vmem [shape: f32[2,8,1], index: 10, kind: output, shape index: {3}]  }
   0x1   :  { %v1220_v0 = vld [vmem:[%s2455_s0 + $0x54] sm:$0x3]  ;;  %v1216_v1 = vld [vmem:[%s2455_s0 + $0x50] sm:$0x3]  ;;  %261 = vst.msk [vmem:[#allocation2] sm:$0xff] %vm260_vm0, %v1594_v2  ;;  %264 = vst.msk [vmem:[#allocation2 + $0x10] sm:$0xff] %vm260_vm0, %v1594_v2 }
   0x2   :  { %267 = vst.msk [vmem:[#allocation3] sm:$0xff] %vm266_vm1, %v1594_v2  ;;  %269 = vst.msk [vmem:[#allocation3 + $0x10] sm:$0xff] %vm266_vm1, %v1594_v2  ;;  %301 = vrot.lane.b32.xlu1 %v1220_v0, %s1595_s17  ;;  %276 = vrot.lane.b32.xlu0 %v1216_v1, %s1595_s17  ;;  %v1222_v3 = vld [vmem:[%s2455_s0 + $0x56] sm:$0x3]  ;;  %v1218_v4 = vld [vmem:[%s2455_s0 + $0x52] sm:$0x3] }
   0x3   :  { %263 = vst.msk [vmem:[#allocation2 + $0x8] sm:$0x3f] %vm262_vm2, %v1594_v2  ;;  %265 = vst.msk [vmem:[#allocation2 + $0x18] sm:$0x3f] %vm262_vm2, %v1594_v2  ;;  %v1226_v5 = vld [vmem:[%s2455_s0 + $0x5a] sm:$0x3] }
   0x4   :  { %v1224_v6 = vld [vmem:[%s2455_s0 + $0x58] sm:$0x3]  ;;  %v1230_v7 = vld [vmem:[%s2455_s0 + $0x5e] sm:$0x3]  ;;  %v1228_v8 = vld [vmem:[%s2455_s0 + $0x5c] sm:$0x3] }
   0x5   :  { %v1596_v9 = vmov 0.0|0.0   ;;  %v416_v10 = vld [vmem:[%s2456_s3 + $0x100] sm:$0xff]  ;;  %v417_v11 = vld [vmem:[%s2456_s3 + $0x108] sm:$0xff]  ;;  %v418_v12 = vld [vmem:[%s2456_s3 + $0x110] sm:$0xff]  ;;  %vm280_vm3 = vcmask 516096   ;;  %vm283_vm4 = vcmask 517121  }
   0x6   :  { %312 = vrot.lane.b32.xlu1 %v1222_v3, %s1595_s17  ;;  %290 = vrot.lane.b32.xlu0 %v1218_v4, %s1595_s17  ;;  %v1709_v13 = vpack.c.bf16 %v417_v11, %v416_v10  ;;  %v419_v14 = vld [vmem:[%s2456_s3 + $0x118] sm:$0xff]  ;;  %v400_v16 = vld [vmem:[%s2456_s3 + $0x80] sm:$0xff]  ;;  %vm53_vm5 = vcmask 254976   ;;  %vm1598_vm6 = vmmov 0   ;;  %vm624_vm7 = vcmask 785408  }
   0x7   :  { %1427 = vmatprep.subr.bf16.mxu1 %v1596_v9  ;;  %v1715_v15 = vpack.c.bf16 %v419_v14, %v418_v12  ;;  %v420_v17 = vld [vmem:[%s2456_s3 + $0x120] sm:$0xff]  ;;  %v421_v18 = vld [vmem:[%s2456_s3 + $0x128] sm:$0xff]  ;;  %v402_v23 = vld [vmem:[%s2456_s3 + $0x90] sm:$0xff]  ;;  %268 = vst.msk [vmem:[#allocation3 + $0x8] sm:$0x3] %vm53_vm5, %v1594_v2  ;;  %vm698_vm8 = vcmask 7168  }
   0x8   :  { %1429 = vmatpush1.bf16.msra.mxu1 %v1709_v13  ;;  %v401_v19 = vld [vmem:[%s2456_s3 + $0x88] sm:$0xff]  ;;  %v384_v21 = vld [vmem:[%s2456_s3] sm:$0xff]  ;;  %v403_v25 = vld [vmem:[%s2456_s3 + $0x98] sm:$0xff]  ;;  %v1747_v26 = vpack.c.bf16 %v421_v18, %v420_v17  ;;  %270 = vst.msk [vmem:[#allocation3 + $0x18] sm:$0x3] %vm53_vm5, %v1594_v2  ;;  %vm718_vm9 = vcmask 1042434  }
   0x9   :  { %1430 = vmatprep.subr.bf16.mxu1 %v1596_v9  ;;  %v1730_v20 = vpack.c.bf16 %v401_v19, %v400_v16  ;;  %v385_v22 = vld [vmem:[%s2456_s3 + $0x8] sm:$0xff]  ;;  %v1750_v27 = vpack.c.bf16 %v403_v25, %v402_v23  ;;  %v386_v28 = vld [vmem:[%s2456_s3 + $0x10] sm:$0xff]  ;;  %v387_v29 = vld [vmem:[%s2456_s3 + $0x18] sm:$0xff]  ;;  %vm721_vm10 = vcmask 1043459   ;;  %vm724_vm11 = vcmask 1044484  }
   0xa   :  { %334 = vrot.lane.b32.xlu1 %v1226_v5, %s1595_s17  ;;  %323 = vrot.lane.b32.xlu0 %v1224_v6, %s1595_s17  ;;  %v1741_v24 = vpack.c.bf16 %v385_v22, %v384_v21  ;;  %v404_v30 = vld [vmem:[%s2456_s3 + $0xa0] sm:$0xff]  ;;  %v422_v31 = vld [vmem:[%s2456_s3 + $0x130] sm:$0xff]  ;;  %v1769_v33 = vpack.c.bf16 %v387_v29, %v386_v28  ;;  %vm715_vm12 = vcmask 1041409   ;;  %vm1122_vm13 = vcmask 0  }
   0xb   :  { %1396 = vmatprep.subr.bf16.mxu0 %v1730_v20  ;;  %v423_v32 = vld [vmem:[%s2456_s3 + $0x138] sm:$0xff]  ;;  %v405_v34 = vld [vmem:[%s2456_s3 + $0xa8] sm:$0xff]  ;;  %v388_v36 = vld [vmem:[%s2456_s3 + $0x20] sm:$0xff]  ;;  %vm727_vm14 = vcmask 1045509   ;;  %vm730_vm15 = vcmask 1046534  }
   0xc   :  { %1432 = vmatpush1.bf16.msra.mxu1 %v1715_v15  ;;  %1398 = vmatpush3.bf16.msra.mxu0 %v1741_v24  ;;  %v1775_v35 = vpack.c.bf16 %v405_v34, %v404_v30  ;;  %v389_v37 = vld [vmem:[%s2456_s3 + $0x28] sm:$0xff]  ;;  %v406_v38 = vld [vmem:[%s2456_s3 + $0xb0] sm:$0xff]  ;;  %v407_v39 = vld [vmem:[%s2456_s3 + $0xb8] sm:$0xff]  ;;  %v1790_v40 = vpack.c.bf16 %v423_v32, %v422_v31 }
   0xd   :  { %1433 = vmatprep.subr.bf16.mxu1 %v1596_v9  ;;  %1400 = vmatprep.subr.bf16.mxu0 %v1750_v27  ;;  %v424_v41 = vld [vmem:[%s2456_s3 + $0x140] sm:$0xff]  ;;  %v425_v42 = vld [vmem:[%s2456_s3 + $0x148] sm:$0xff]  ;;  %v1800_v43 = vpack.c.bf16 %v389_v37, %v388_v36  ;;  %v1803_v44 = vpack.c.bf16 %v407_v39, %v406_v38  ;;  %v390_v45 = vld [vmem:[%s2456_s3 + $0x30] sm:$0xff] }
   0xe   :  { %356 = vrot.lane.b32.xlu1 %v1230_v7, %s1595_s17  ;;  %345 = vrot.lane.b32.xlu0 %v1228_v8, %s1595_s17  ;;  %v391_v46 = vld [vmem:[%s2456_s3 + $0x38] sm:$0xff]  ;;  %v408_v47 = vld [vmem:[%s2456_s3 + $0xc0] sm:$0xff]  ;;  %v1818_v49 = vpack.c.bf16 %v425_v42, %v424_v41 }
   0xf   :  { %v409_v48 = vld [vmem:[%s2456_s3 + $0xc8] sm:$0xff]  ;;  %v426_v50 = vld [vmem:[%s2456_s3 + $0x150] sm:$0xff]  ;;  %v427_v51 = vld [vmem:[%s2456_s3 + $0x158] sm:$0xff]  ;;  %v1828_v52 = vpack.c.bf16 %v391_v46, %v390_v45 }
  0x10   :  { %1435 = vmatpush1.bf16.msra.mxu1 %v1747_v26  ;;  %1402 = vmatpush3.bf16.msra.mxu0 %v1769_v33  ;;  %v1831_v53 = vpack.c.bf16 %v409_v48, %v408_v47  ;;  %v392_v54 = vld [vmem:[%s2456_s3 + $0x40] sm:$0xff]  ;;  %v393_v55 = vld [vmem:[%s2456_s3 + $0x48] sm:$0xff]  ;;  %v410_v56 = vld [vmem:[%s2456_s3 + $0xd0] sm:$0xff]  ;;  %v1846_v58 = vpack.c.bf16 %v427_v51, %v426_v50 }
  0x11   :  { %1436 = vmatprep.subr.bf16.mxu1 %v1596_v9  ;;  %1404 = vmatprep.subr.bf16.mxu0 %v1775_v35  ;;  %v411_v57 = vld [vmem:[%s2456_s3 + $0xd8] sm:$0xff]  ;;  %v428_v59 = vld [vmem:[%s2456_s3 + $0x160] sm:$0xff]  ;;  %v429_v60 = vld [vmem:[%s2456_s3 + $0x168] sm:$0xff]  ;;  %v1856_v61 = vpack.c.bf16 %v393_v55, %v392_v54 }
  0x12   :  { %v1859_v62 = vpack.c.bf16 %v411_v57, %v410_v56  ;;  %v394_v63 = vld [vmem:[%s2456_s3 + $0x50] sm:$0xff]  ;;  %v395_v0 = vld [vmem:[%s2456_s3 + $0x58] sm:$0xff]  ;;  %v412_v1 = vld [vmem:[%s2456_s3 + $0xe0] sm:$0xff]  ;;  %v1874_v4 = vpack.c.bf16 %v429_v60, %v428_v59 }
  0x13   :  { %v413_v3 = vld [vmem:[%s2456_s3 + $0xe8] sm:$0xff]  ;;  %v430_v5 = vld [vmem:[%s2456_s3 + $0x170] sm:$0xff]  ;;  %v431_v6 = vld [vmem:[%s2456_s3 + $0x178] sm:$0xff]  ;;  %v1884_v7 = vpack.c.bf16 %v395_v0, %v394_v63 }
  0x14   :  { %1438 = vmatpush1.bf16.msra.mxu1 %v1790_v40  ;;  %1406 = vmatpush3.bf16.msra.mxu0 %v1800_v43  ;;  %v1887_v8 = vpack.c.bf16 %v413_v3, %v412_v1  ;;  %v396_v10 = vld [vmem:[%s2456_s3 + $0x60] sm:$0xff]  ;;  %v397_v11 = vld [vmem:[%s2456_s3 + $0x68] sm:$0xff]  ;;  %v1896_v12 = vpack.c.bf16 %v431_v6, %v430_v5  ;;  %v434_v19 = vld [vmem:[%s2456_s3 + $0x190] sm:$0xff] }
  0x15   :  { %1439 = vmatprep.subr.bf16.mxu1 %v1596_v9  ;;  %1408 = vmatprep.subr.bf16.mxu0 %v1803_v44  ;;  %v432_v14 = vld [vmem:[%s2456_s3 + $0x180] sm:$0xff]  ;;  %v433_v16 = vld [vmem:[%s2456_s3 + $0x188] sm:$0xff]  ;;  %v1906_v17 = vpack.c.bf16 %v397_v11, %v396_v10  ;;  %v435_v21 = vld [vmem:[%s2456_s3 + $0x198] sm:$0xff] }
  0x16   :  { %v1910_v18 = vpack.c.bf16 %v433_v16, %v432_v14  ;;  %v1921_v22 = vpack.c.bf16 %v435_v21, %v434_v19  ;;  %v436_v23 = vld [vmem:[%s2456_s3 + $0x1a0] sm:$0xff]  ;;  %v437_v25 = vld [vmem:[%s2456_s3 + $0x1a8] sm:$0xff]  ;;  %v438_v29 = vld [vmem:[%s2456_s3 + $0x1b0] sm:$0xff] }
  0x17   :  { %v1931_v28 = vpack.c.bf16 %v437_v25, %v436_v23  ;;  %v439_v30 = vld [vmem:[%s2456_s3 + $0x1b8] sm:$0xff]  ;;  %v1219_v32 = vld [vmem:[%s2455_s0 + $0x44] sm:$0x3]  ;;  %v1215_v34 = vld [vmem:[%s2455_s0 + $0x40] sm:$0x3] }
  0x18   :  { %1441 = vmatpush1.bf16.msra.mxu1 %v1818_v49  ;;  %1410 = vmatpush3.bf16.msra.mxu0 %v1828_v52  ;;  %v1941_v31 = vpack.c.bf16 %v439_v30, %v438_v29  ;;  %v1217_v41 = vld [vmem:[%s2455_s0 + $0x42] sm:$0x3]  ;;  %v1225_v48 = vld [vmem:[%s2455_s0 + $0x4a] sm:$0x3]  ;;  %v1223_v50 = vld [vmem:[%s2455_s0 + $0x48] sm:$0x3] }
  0x19   :  { %1442 = vmatprep.subr.bf16.mxu1 %v1596_v9  ;;  %1412 = vmatprep.subr.bf16.mxu0 %v1831_v53  ;;  %v1229_v57 = vld [vmem:[%s2455_s0 + $0x4e] sm:$0x3]  ;;  %v414_v59 = vld [vmem:[%s2456_s3 + $0xf0] sm:$0xff]  ;;  %v415_v60 = vld [vmem:[%s2456_s3 + $0xf8] sm:$0xff] }
  0x1a   :  { %v1227_v63 = vld [vmem:[%s2455_s0 + $0x4c] sm:$0x3]  ;;  %v1423_v0 = vpack.c.bf16 %v415_v60, %v414_v59  ;;  %v398_v1 = vld [vmem:[%s2456_s3 + $0x70] sm:$0xff]  ;;  %v399_v3 = vld [vmem:[%s2456_s3 + $0x78] sm:$0xff]  ;;  %s1597_s3 = smov 64  }
  0x1b   :  { %v1425_v5 = vpack.c.bf16 %v399_v3, %v398_v1 }
  0x1c   :  { %1444 = vmatpush1.bf16.msra.mxu1 %v1846_v58  ;;  %1414 = vmatpush3.bf16.msra.mxu0 %v1856_v61 }
  0x1d   :  { %1445 = vmatprep.subr.bf16.mxu1 %v1596_v9  ;;  %1416 = vmatprep.subr.bf16.mxu0 %v1859_v62 }
  0x20   :  { %1447 = vmatpush1.bf16.msra.mxu1 %v1874_v4  ;;  %1418 = vmatpush3.bf16.msra.mxu0 %v1884_v7 }
  0x21   :  { %1448 = vmatprep.subr.bf16.mxu1 %v1596_v9  ;;  %1420 = vmatprep.subr.bf16.mxu0 %v1887_v8 }
  0x24   :  { %1450 = vmatpush1.bf16.msra.mxu1 %v1896_v12  ;;  %1422 = vmatpush3.bf16.msra.mxu0 %v1906_v17 }
  0x25   :  { %1451 = vmatprep.subr.bf16.mxu1 %v1596_v9  ;;  %1424 = vmatprep.subr.bf16.mxu0 %v1423_v0 }
  0x28   :  { %1453 = vmatpush1.bf16.msra.mxu1 %v1910_v18  ;;  %1426 = vmatpush3.bf16.msra.mxu0 %v1425_v5 }
  0x29   :  { %1454 = vmatprep.subr.bf16.mxu1 %v1596_v9  ;;  %1463 = vmatprep.subr.bf16.mxu0 %v1596_v9 }
  0x2c   :  { %1456 = vmatpush1.bf16.msra.mxu1 %v1921_v22 }
  0x2d   :  { %1457 = vmatprep.subr.bf16.mxu1 %v1596_v9 }
  0x30   :  { %1459 = vmatpush1.bf16.msra.mxu1 %v1931_v28 }
  0x31   :  { %1460 = vmatprep.subr.bf16.mxu1 %v1596_v9 }
  0x34   :  { %1462 = vmatpush1.bf16.msra.mxu1 %v1941_v31 }
  0x35   :  { %1482 = vmatprep.subr.bf16.mxu1 %v1730_v20  ;;  %v1221_v20 = vld [vmem:[%s2455_s0 + $0x46] sm:$0x3] }
  0x74   :  { %v302_v36 = vpop.permute.xlu1 %301  ;;  %v277_v37 = vpop.permute.xlu0 %276 }
  0x75   :  { %v304_v38 = vsel %vm266_vm1, %v1219_v32, %v302_v36  ;;  %v279_v39 = vsel %vm266_vm1, %v1215_v34, %v277_v37 }
  0x76   :  { %305 = vst.msk [vmem:[#allocation2 + $0x5] sm:$0x1] %vm280_vm3, %v304_v38  ;;  %281 = vst.msk [vmem:[#allocation2 + $0x3] sm:$0x1] %vm280_vm3, %v279_v39 }
  0x77   :  { %306 = vst.msk [vmem:[#allocation2 + $0x14] sm:$0x2] %vm283_vm4, %v304_v38  ;;  %284 = vst.msk [vmem:[#allocation2 + $0x12] sm:$0x2] %vm283_vm4, %v279_v39 }
  0x78   :  { %v313_v42 = vpop.permute.xlu1 %312  ;;  %v291_v45 = vpop.permute.xlu0 %290 }
  0x79   :  { %v315_v46 = vsel %vm266_vm1, %v1221_v20, %v313_v42  ;;  %v293_v47 = vsel %vm266_vm1, %v1217_v41, %v291_v45  ;;  %v614_v42 = vld [vmem:[%s2457_s5 + $0x48] sm:$0xff] }
  0x7a   :  { %316 = vst.msk [vmem:[#allocation2 + $0x6] sm:$0x1] %vm280_vm3, %v315_v46  ;;  %294 = vst.msk [vmem:[#allocation2 + $0x4] sm:$0x1] %vm280_vm3, %v293_v47 }
  0x7b   :  { %317 = vst.msk [vmem:[#allocation2 + $0x15] sm:$0x2] %vm283_vm4, %v315_v46  ;;  %295 = vst.msk [vmem:[#allocation2 + $0x13] sm:$0x2] %vm283_vm4, %v293_v47  ;;  %v615_v46 = vld [vmem:[%s2457_s5 + $0x50] sm:$0xff]  ;;  %v616_v47 = vld [vmem:[%s2457_s5 + $0x58] sm:$0xff] }
  0x7c   :  { %v335_v51 = vpop.permute.xlu1 %334  ;;  %v324_v54 = vpop.permute.xlu0 %323 }
  0x7d   :  { %v337_v55 = vsel %vm266_vm1, %v1225_v48, %v335_v51  ;;  %v326_v56 = vsel %vm266_vm1, %v1223_v50, %v324_v54  ;;  %v2086_v48 = vpack.c.bf16 %v616_v47, %v615_v46  ;;  %v38_v47 = vld [vmem:[%s2455_s0 + $0xa] sm:$0x3] }
  0x7e   :  { %338 = vst.msk [vmem:[#allocation2 + $0x8] sm:$0x1] %vm280_vm3, %v337_v55  ;;  %327 = vst.msk [vmem:[#allocation2 + $0x7] sm:$0x1] %vm280_vm3, %v326_v56 }
  0x7f   :  { %339 = vst.msk [vmem:[#allocation2 + $0x17] sm:$0x2] %vm283_vm4, %v337_v55  ;;  %328 = vst.msk [vmem:[#allocation2 + $0x16] sm:$0x2] %vm283_vm4, %v326_v56  ;;  %v2094_v55 = vld [vmem:[%s2458_s4] ss:$0 sm:$0xff] }
  0x80   :  { %v357_v6 = vpop.permute.xlu1 %356  ;;  %v346_v10 = vpop.permute.xlu0 %345 }
  0x81   :  { %v359_v11 = vsel %vm266_vm1, %v1229_v57, %v357_v6  ;;  %v348_v14 = vsel %vm266_vm1, %v1227_v63, %v346_v10 }
  0x82   :  { %360 = vst.msk [vmem:[#allocation2 + $0xa] sm:$0x1] %vm280_vm3, %v359_v11  ;;  %349 = vst.msk [vmem:[#allocation2 + $0x9] sm:$0x1] %vm280_vm3, %v348_v14 }
  0x83   :  { %361 = vst.msk [vmem:[#allocation2 + $0x19] sm:$0x2] %vm283_vm4, %v359_v11  ;;  %350 = vst.msk [vmem:[#allocation2 + $0x18] sm:$0x2] %vm283_vm4, %v348_v14  ;;  %v16_v11 = vstv %s2459_s6 }
  0x84   :  { %17 = vst [vmem:[#allocation4] sm:$0x1] %v16_v11 }
  0x85   :  { %v363_v16 = vld [vmem:[#allocation2 + $0x1] sm:$0xff] }
  0x86   :  { %v362_v39 = vld [vmem:[#allocation2] sm:$0xff] }
  0x89   :  { %v368_v19 = vld [vmem:[#allocation2 + $0x6] sm:$0xff] }
  0x8a   :  { %v367_v21 = vld [vmem:[#allocation2 + $0x5] sm:$0xff]  ;;  %1232 = vmatprep.mubr.msk.f32.mxu1 %vm260_vm0, %v368_v19  ;;  %v770_v3 = vld [vmem:[#allocation2 + $0x13] sm:$0xff] }
  0x8b   :  { %v365_v23 = vld [vmem:[#allocation2 + $0x3] sm:$0xff]  ;;  %378 = vrot.lane.b32.xlu1 %v367_v21, %s1597_s3  ;;  %v772_v10 = vld [vmem:[#allocation2 + $0x15] sm:$0xff] }
  0x8c   :  { %v1577_v25 = vpack.i.bf16 %v363_v16, %v365_v23  ;;  %v366_v30 = vld [vmem:[#allocation2 + $0x4] sm:$0xff] }
  0x8d   :  { %v364_v38 = vld [vmem:[#allocation2 + $0x2] sm:$0xff] }
  0x8e   :  { %1578 = vrot.lane.b32.xlu0 %v1577_v25, %s1597_s3  ;;  %v773_v25 = vld [vmem:[#allocation2 + $0x16] sm:$0xff] }
  0xfd   :  { %v379_v29 = vpop.permute.xlu1 %378 }
  0xfe   :  { %v383_v32 = vsel %vm260_vm0, %v366_v30, %v379_v29 }
  0xff   :  { %585 = vmatmul.mubr.f32.vlgmr.msra.gmra.mrb[0].mxu1 %v383_v32 }
 0x100   :  { %v1579_v34 = vpop.permute.xlu0 %1578  ;;  %1484 = vmatpush3.bf16.msra.mxu1 %v1741_v24  ;;  %v605_v24 = vld [vmem:[%s2457_s5] sm:$0xff] }
 0x101   :  { %v1581_v36 = vunpack.i.h.bf16 %v1579_v34  ;;  %v1580_v37 = vunpack.i.l.bf16 %v1579_v34  ;;  %1486 = vmatprep.subr.bf16.mxu1 %v1750_v27  ;;  %v606_v27 = vld [vmem:[%s2457_s5 + $0x8] sm:$0xff]  ;;  %v769_v34 = vld [vmem:[#allocation2 + $0x12] sm:$0xff] }
 0x103   :  { %v382_v20 = vsel %vm260_vm0, %v364_v38, %v1580_v37  ;;  %v381_v41 = vsel %vm260_vm0, %v362_v39, %v1581_v36  ;;  %v767_v36 = vld [vmem:[#allocation2 + $0x10] sm:$0xff] }
 0x104   :  { %514 = vmatprep.mubr.f32.mxu0 %v382_v20  ;;  %1488 = vmatpush3.bf16.msra.mxu1 %v1769_v33  ;;  %v607_v33 = vld [vmem:[%s2457_s5 + $0x10] sm:$0xff] }
 0x105   :  { %515 = vmatmul.mubr.f32.vlgmr.msra.gmra.mrb[0].mxu0 %v381_v41  ;;  %1490 = vmatprep.subr.bf16.mxu1 %v1775_v35  ;;  %v2040_v35 = vpack.c.bf16 %v606_v27, %v605_v24  ;;  %v33_v24 = vld [vmem:[%s2455_s0] sm:$0x3] }
 0x106   :  { %1365 = vmatprep.mubr.msk.f32.mxu0 %vm1598_vm6, %v1594_v2  ;;  %v1188_v27 = vld [vmem:[%s2461_s1] ss:$0 sm:$0xff] }
 0x107   :  { %1465 = vmatpush3.bf16.msra.mxu0 %v2040_v35 }
 0x108   :  { %1492 = vmatpush3.bf16.msra.mxu1 %v1800_v43  ;;  %v608_v43 = vld [vmem:[%s2457_s5 + $0x18] sm:$0xff]  ;;  %1466 = vmatprep.subr.bf16.mxu0 %v1596_v9 }
 0x109   :  { %1494 = vmatprep.subr.bf16.mxu1 %v1803_v44  ;;  %v2046_v44 = vpack.c.bf16 %v608_v43, %v607_v33  ;;  %v45_v33 = vmul.f32 %v1188_v27, %v33_v24  ;;  %v34_v43 = vld [vmem:[%s2455_s0 + $0x2] sm:$0x3] }
 0x10a   :  { %v1199_v24 = vld [vmem:[%s2455_s0 + $0x22] sm:$0x3] }
 0x10b   :  { %1468 = vmatpush3.bf16.msra.mxu0 %v2046_v44 }
 0x10c   :  { %1496 = vmatpush3.bf16.msra.mxu1 %v1828_v52  ;;  %v609_v52 = vld [vmem:[%s2457_s5 + $0x20] sm:$0xff]  ;;  %1469 = vmatprep.subr.bf16.mxu0 %v1596_v9 }
 0x10d   :  { %1498 = vmatprep.subr.bf16.mxu1 %v1831_v53  ;;  %v610_v53 = vld [vmem:[%s2457_s5 + $0x28] sm:$0xff] }
 0x110   :  { %1500 = vmatpush3.bf16.msra.mxu1 %v1856_v61  ;;  %v2056_v61 = vpack.c.bf16 %v610_v53, %v609_v52  ;;  %v46_v53 = vmul.f32 %v1188_v27, %v34_v43 }
 0x111   :  { %1502 = vmatprep.subr.bf16.mxu1 %v1859_v62  ;;  %v611_v62 = vld [vmem:[%s2457_s5 + $0x30] sm:$0xff] }
 0x112   :  { %1471 = vmatpush3.bf16.msra.mxu0 %v2056_v61 }
 0x113   :  { %1472 = vmatprep.subr.bf16.mxu0 %v1596_v9 }
 0x114   :  { %1504 = vmatpush3.bf16.msra.mxu1 %v1884_v7  ;;  %v612_v7 = vld [vmem:[%s2457_s5 + $0x38] sm:$0xff] }
 0x115   :  { %1506 = vmatprep.subr.bf16.mxu1 %v1887_v8  ;;  %v2066_v8 = vpack.c.bf16 %v612_v7, %v611_v62 }
 0x117   :  { %1474 = vmatpush3.bf16.msra.mxu0 %v2066_v8 }
 0x118   :  { %1508 = vmatpush3.bf16.msra.mxu1 %v1906_v17  ;;  %v613_v17 = vld [vmem:[%s2457_s5 + $0x40] sm:$0xff]  ;;  %1475 = vmatprep.subr.bf16.mxu0 %v1596_v9 }
 0x119   :  { %1510 = vmatprep.subr.bf16.mxu1 %v1423_v0  ;;  %v2076_v45 = vpack.c.bf16 %v614_v42, %v613_v17  ;;  %v2186_v42 = vld [vmem:[%s2461_s1 + $0x1] ss:$0 sm:$0xff] }
 0x11a   :  { %v164_v43 = vmul.f32 %v2186_v42, %v1199_v24 }
 0x11b   :  { %1477 = vmatpush3.bf16.msra.mxu0 %v2076_v45 }
 0x11c   :  { %1512 = vmatpush3.bf16.msra.mxu1 %v1425_v5  ;;  %1478 = vmatprep.subr.bf16.mxu0 %v1596_v9  ;;  %v768_v5 = vld [vmem:[#allocation2 + $0x11] sm:$0xff] }
 0x11d   :  { %1549 = vmatprep.subr.bf16.mxu1 %v1596_v9  ;;  %v1582_v6 = vpack.i.bf16 %v768_v5, %v770_v3 }
 0x11f   :  { %1480 = vmatpush3.bf16.msra.mxu0 %v2086_v48 }
 0x120   :  { %1513 = vmatprep.subr.bf16.mxu0 %v1596_v9 }
 0x1d2   :  { %v586_v50 = vpop.f32.mrb[0].mxu1 }
 0x1d3   :  { %v588_v51 = vpop.f32.mrb[1].mxu1 }
 0x1d4   :  { %v50_v51 = vmul.f32 %v1188_v27, %v38_v47  ;;  %v1197_v47 = vld [vmem:[%s2462_s2] ss:$0 sm:$0xff] }
 0x1d8   :  { %v1277_v54 = vpop.f32.mrb[0].mxu0 }
 0x1d9   :  { %v1278_v56 = vpop.f32.mrb[1].mxu0 }
 0x1da   :  { %v1279_v57 = vadd.f32 %v1278_v56, %v1277_v54  ;;  %v40_v56 = vld [vmem:[%s2455_s0 + $0xe] sm:$0x3] }
 0x1dc   :  { %v517_v59 = vadd.f32 %v1279_v57, %v2094_v55  ;;  %v69_v57 = vsel %vm53_vm5, %v50_v51, 0.0 }
 0x1de   :  { %v587_v60 = vadd.f32 %v586_v50, %v517_v59  ;;  %v39_v50 = vld [vmem:[%s2455_s0 + $0xc] sm:$0x3]  ;;  %v52_v59 = vmul.f32 %v1188_v27, %v40_v56  ;;  %v1202_v56 = vld [vmem:[%s2455_s0 + $0x28] sm:$0x3] }
 0x1e0   :  { %v590_v63 = vmax.f32 %v587_v60, 0.0 }
 0x1e2   :  { %591 = vst.msk [vmem:[#allocation3 + $0x1] sm:$0xff] %vm266_vm1, %v590_v63  ;;  %v75_v63 = vsel %vm53_vm5, %v52_v59, 0.0  ;;  %v167_v59 = vmul.f32 %v2186_v42, %v1202_v56 }
 0x1e9   :  { %v594_v0 = vld [vmem:[#allocation3 + $0x2] sm:$0xff] }
 0x1ea   :  { %v593_v1 = vld [vmem:[#allocation3 + $0x1] sm:$0xff]  ;;  %600 = vrot.lane.b32.xlu1 %v594_v0, %s1597_s3 }
 0x1eb   :  { %596 = vrot.lane.b32.xlu0 %v593_v1, %s1595_s17  ;;  %v592_v19 = vld [vmem:[#allocation3] sm:$0xff] }
 0x1ee   :  { %783 = vrot.lane.b32.xlu1 %v772_v10, %s1597_s3  ;;  %v1601_v10 = vmov 1  }
 0x1ef   :  { %1583 = vrot.lane.b32.xlu0 %v1582_v6, %s1597_s3 }
 0x1f0   :  { %1589 = vset.pattern.permute.xlu0 %v1601_v10 }
 0x25c   :  { %v601_v14 = vpop.permute.xlu1 %600 }
 0x25d   :  { %v597_v16 = vpop.permute.xlu0 %596 }
 0x25e   :  { %v603_v21 = vsel %vm266_vm1, %v592_v19, %v597_v16  ;;  %v1190_v16 = vld [vmem:[%s2455_s0 + $0x12] sm:$0x3] }
 0x25f   :  { %v604_v23 = vsel %vm260_vm0, %v603_v21, %v601_v14  ;;  %v1189_v14 = vld [vmem:[%s2455_s0 + $0x10] sm:$0x3]  ;;  %v1191_v21 = vld [vmem:[%s2455_s0 + $0x14] sm:$0x3] }
 0x260   :  { %1366 = vmatmul.mubr.msk.f32.vlgmr.msra.gmra.mrb[2].mxu0 %vm624_vm7, %v604_v23  ;;  %v1192_v23 = vld [vmem:[%s2455_s0 + $0x16] sm:$0x3] }
 0x261   :  { %1515 = vmatpush1.bf16.msra.mxu0 %v1709_v13  ;;  %v1584_v29 = vpop.permute.xlu0 %1583  ;;  %1236 = vmatprep.mubr.msk.f32.mxu0 %vm260_vm0, %v773_v25  ;;  %v771_v13 = vld [vmem:[#allocation2 + $0x14] sm:$0xff] }
 0x262   :  { %v1586_v30 = vunpack.i.h.bf16 %v1584_v29  ;;  %v1585_v32 = vunpack.i.l.bf16 %v1584_v29  ;;  %1516 = vmatprep.subr.bf16.mxu0 %v1596_v9 }
 0x264   :  { %v787_v37 = vsel %vm260_vm0, %v769_v34, %v1585_v32  ;;  %v786_v38 = vsel %vm260_vm0, %v767_v36, %v1586_v30 }
 0x265   :  { %1518 = vmatpush1.bf16.msra.mxu0 %v1715_v15  ;;  %919 = vmatprep.mubr.f32.mxu1 %v787_v37 }
 0x266   :  { %920 = vmatmul.mubr.f32.vlgmr.msra.gmra.mrb[2].mxu1 %v786_v38  ;;  %1519 = vmatprep.subr.bf16.mxu0 %v1596_v9  ;;  %v1193_v38 = vld [vmem:[%s2455_s0 + $0x18] sm:$0x3] }
 0x267   :  { %1551 = vmatpush3.bf16.msra.mxu1 %v2040_v35  ;;  %1392 = vmatprep.mubr.msk.f32.mxu1 %vm1598_vm6, %v1594_v2  ;;  %v784_v2 = vpop.permute.xlu1 %783  ;;  %v35_v35 = vld [vmem:[%s2455_s0 + $0x4] sm:$0x3] }
 0x268   :  { %1552 = vmatprep.subr.bf16.mxu1 %v1596_v9  ;;  %v788_v15 = vsel %vm260_vm0, %v771_v13, %v784_v2  ;;  %v47_v52 = vmul.f32 %v1188_v27, %v35_v35  ;;  %v1194_v2 = vld [vmem:[%s2455_s0 + $0x1a] sm:$0x3] }
 0x269   :  { %1521 = vmatpush1.bf16.msra.mxu0 %v1747_v26  ;;  %v2150_v26 = vld [vmem:[#allocation4] ss:$0 sm:$0xff] }
 0x26a   :  { %1522 = vmatprep.subr.bf16.mxu0 %v1596_v9  ;;  %v60_v62 = vsel %vm53_vm5, %v47_v52, 0.0  ;;  %v1207_v52 = vld [vmem:[%s2455_s0 + $0x30] sm:$0x3] }
 0x26b   :  { %1554 = vmatpush3.bf16.msra.mxu1 %v2046_v44  ;;  %v54_v44 = vsel %vm53_vm5, %v45_v33, 0.0 }
 0x26c   :  { %1555 = vmatprep.subr.bf16.mxu1 %v1596_v9 }
 0x26d   :  { %1524 = vmatpush1.bf16.msra.mxu0 %v1790_v40 }
 0x26e   :  { %1525 = vmatprep.subr.bf16.mxu0 %v1596_v9 }
 0x26f   :  { %1557 = vmatpush3.bf16.msra.mxu1 %v2056_v61  ;;  %v36_v61 = vld [vmem:[%s2455_s0 + $0x6] sm:$0x3] }
 0x270   :  { %1558 = vmatprep.subr.bf16.mxu1 %v1596_v9  ;;  %v48_v7 = vmul.f32 %v1188_v27, %v36_v61 }
 0x271   :  { %1527 = vmatpush1.bf16.msra.mxu0 %v1818_v49 }
 0x272   :  { %1528 = vmatprep.subr.bf16.mxu0 %v1596_v9  ;;  %v63_v17 = vsel %vm53_vm5, %v48_v7, 0.0 }
 0x273   :  { %1560 = vmatpush3.bf16.msra.mxu1 %v2066_v8  ;;  %v57_v8 = vsel %vm53_vm5, %v46_v53, 0.0  ;;  %v174_v53 = vsel %vm53_vm5, %v164_v43, 0.0 }
 0x274   :  { %1561 = vmatprep.subr.bf16.mxu1 %v1596_v9 }
 0x275   :  { %1530 = vmatpush1.bf16.msra.mxu0 %v1846_v58 }
 0x276   :  { %1531 = vmatprep.subr.bf16.mxu0 %v1596_v9 }
 0x277   :  { %1563 = vmatpush3.bf16.msra.mxu1 %v2076_v45  ;;  %v37_v45 = vld [vmem:[%s2455_s0 + $0x8] sm:$0x3] }
 0x278   :  { %1564 = vmatprep.subr.bf16.mxu1 %v1596_v9  ;;  %v49_v46 = vmul.f32 %v1188_v27, %v37_v45 }
 0x279   :  { %1533 = vmatpush1.bf16.msra.mxu0 %v1874_v4 }
 0x27a   :  { %1534 = vmatprep.subr.bf16.mxu0 %v1596_v9  ;;  %v66_v54 = vsel %vm53_vm5, %v49_v46, 0.0 }
 0x27b   :  { %1566 = vmatpush3.bf16.msra.mxu1 %v2086_v48  ;;  %v1600_v48 = vmov 0  }
 0x27c   :  { %1587 = vset.pattern.permute.xlu1 %v1600_v48  ;;  %v1201_v48 = vld [vmem:[%s2455_s0 + $0x26] sm:$0x3] }
 0x27d   :  { %1536 = vmatpush1.bf16.msra.mxu0 %v1896_v12  ;;  %v166_v51 = vmul.f32 %v2186_v42, %v1201_v48 }
 0x27e   :  { %1537 = vmatprep.subr.bf16.mxu0 %v1596_v9 }
 0x281   :  { %1539 = vmatpush1.bf16.msra.mxu0 %v1910_v18 }
 0x282   :  { %1540 = vmatprep.subr.bf16.mxu0 %v1596_v9 }
 0x285   :  { %1542 = vmatpush1.bf16.msra.mxu0 %v1921_v22 }
 0x286   :  { %1543 = vmatprep.subr.bf16.mxu0 %v1596_v9 }
 0x289   :  { %1545 = vmatpush1.bf16.msra.mxu0 %v1931_v28 }
 0x28a   :  { %1546 = vmatprep.subr.bf16.mxu0 %v1596_v9 }
 0x28d   :  { %1548 = vmatpush1.bf16.msra.mxu0 %v1941_v31 }
 0x290   :  { %990 = vmatmul.mubr.f32.vlgmr.msra.gmra.mrb[4].mxu0 %v788_v15 }
 0x333   :  { %v694_v40 = vpop.f32.mrb[2].mxu0 }
 0x334   :  { %v2153_v49 = vadd.f32 %v2150_v26, %v694_v40  ;;  %v1367_v58 = vpop.f32.mrb[3].mxu0 }
 0x336   :  { %699 = vst.msk [vmem:[%s2460_s8] sm:$0xff] %vm698_vm8, %v2153_v49 }
 0x339   :  { %v1325_v9 = vpop.f32.mrb[2].mxu1 }
 0x33a   :  { %v1326_v4 = vpop.f32.mrb[3].mxu1 }
 0x33b   :  { %v1327_v12 = vadd.f32 %v1326_v4, %v1325_v9  ;;  %v1195_v4 = vld [vmem:[%s2455_s0 + $0x1c] sm:$0x3] }
 0x33d   :  { %v922_v18 = vadd.f32 %v1327_v12, %v2094_v55  ;;  %v51_v55 = vmul.f32 %v1188_v27, %v39_v50  ;;  %v1196_v12 = vld [vmem:[%s2455_s0 + $0x1e] sm:$0x3] }
 0x33f   :  { %v72_v60 = vsel %vm53_vm5, %v51_v55, 0.0  ;;  %v180_v55 = vsel %vm53_vm5, %v166_v51, 0.0 }
 0x363   :  { %v991_v22 = vpop.f32.mrb[4].mxu0 }
 0x364   :  { %v992_v28 = vadd.f32 %v991_v22, %v922_v18  ;;  %v993_v31 = vpop.f32.mrb[5].mxu0  ;;  %v1198_v18 = vld [vmem:[%s2455_s0 + $0x20] sm:$0x3] }
 0x366   :  { %v995_v39 = vmax.f32 %v992_v28, 0.0 }
 0x368   :  { %997 = vst.msk [vmem:[#allocation3 + $0x11] sm:$0xff] %vm266_vm1, %v995_v39 }
 0x36f   :  { %v1000_v20 = vld [vmem:[#allocation3 + $0x12] sm:$0xff] }
 0x370   :  { %v999_v41 = vld [vmem:[#allocation3 + $0x11] sm:$0xff]  ;;  %1006 = vrot.lane.b32.xlu1 %v1000_v20, %s1597_s3 }
 0x371   :  { %1002 = vrot.lane.b32.xlu0 %v999_v41, %s1595_s17  ;;  %v998_v3 = vld [vmem:[#allocation3 + $0x10] sm:$0xff]  ;;  %v163_v41 = vmul.f32 %v2186_v42, %v1198_v18 }
 0x373   :  { %v171_v35 = vsel %vm53_vm5, %v163_v41, 0.0 }
 0x390   :  { %55 = vadd.xlane.f32.xlu0 %v54_v44 }
 0x394   :  { %61 = vadd.xlane.f32.xlu0 %v60_v62  ;;  %58 = vadd.xlane.f32.xlu1 %v57_v8  ;;  %v1208_v62 = vld [vmem:[%s2455_s0 + $0x32] sm:$0x3] }
 0x398   :  { %64 = vadd.xlane.f32.xlu0 %v63_v17  ;;  %v1209_v17 = vld [vmem:[%s2455_s0 + $0x34] sm:$0x3] }
 0x3a5   :  { %88 = vrot.lane.b32.xlu1 %v1188_v27, %s1599_s22 }
 0x3ae   :  { %205 = vrot.lane.b32.xlu0 %v2186_v42, %s1599_s22 }
 0x3c9   :  { %67 = vadd.xlane.f32.xlu1 %v66_v54  ;;  %v1210_v54 = vld [vmem:[%s2455_s0 + $0x36] sm:$0x3] }
 0x3cd   :  { %70 = vadd.xlane.f32.xlu0 %v69_v57  ;;  %73 = vadd.xlane.f32.xlu1 %v72_v60 }
 0x3d1   :  { %76 = vadd.xlane.f32.xlu0 %v75_v63  ;;  %v1211_v63 = vld [vmem:[%s2455_s0 + $0x38] sm:$0x3] }
 0x3e2   :  { %v1007_v0 = vpop.permute.xlu1 %1006 }
 0x3e3   :  { %v1003_v1 = vpop.permute.xlu0 %1002 }
 0x3e4   :  { %v1009_v5 = vsel %vm266_vm1, %v998_v3, %v1003_v1  ;;  %v1203_v1 = vld [vmem:[%s2455_s0 + $0x2a] sm:$0x3]  ;;  %vm1120_vm1 = vcmask 7169  }
 0x3e5   :  { %v1010_v6 = vsel %vm260_vm0, %v1009_v5, %v1007_v0  ;;  %v183_v0 = vsel %vm53_vm5, %v167_v59, 0.0  ;;  %v168_v5 = vmul.f32 %v2186_v42, %v1203_v1  ;;  %vm733_vm0 = vcmask 1047559  }
 0x3e6   :  { %1393 = vmatmul.mubr.msk.f32.vlgmr.msra.gmra.mrb[4].mxu1 %vm624_vm7, %v1010_v6 }
 0x41d   :  { %v2223_v25 = vpop.xlane.xlu0 %55 }
 0x421   :  { %v2209_v11 = vpop.xlane.xlu1 %58  ;;  %v2233_v13 = vpop.xlane.xlu0 %61 }
 0x425   :  { %v89_v19 = vpop.permute.xlu1 %88  ;;  %v2248_v20 = vpop.xlane.xlu0 %64 }
 0x426   :  { %v91_v29 = vmul.f32 %v1189_v14, %v89_v19  ;;  %v92_v30 = vmul.f32 %v1190_v16, %v89_v19  ;;  %v93_v36 = vmul.f32 %v1191_v21, %v89_v19  ;;  %v94_v37 = vmul.f32 %v1192_v23, %v89_v19  ;;  %v1204_v16 = vld [vmem:[%s2455_s0 + $0x2c] sm:$0x3] }
 0x427   :  { %v95_v58 = vmul.f32 %v1193_v38, %v89_v19  ;;  %v96_v9 = vmul.f32 %v1194_v2, %v89_v19  ;;  %v97_v31 = vmul.f32 %v1195_v4, %v89_v19  ;;  %v98_v39 = vmul.f32 %v1196_v12, %v89_v19  ;;  %v1214_v38 = vld [vmem:[%s2455_s0 + $0x3e] sm:$0x3] }
 0x428   :  { %v99_v32 = vsel %vm53_vm5, %v91_v29, 0.0  ;;  %v102_v34 = vsel %vm53_vm5, %v92_v30, 0.0  ;;  %v105_v15 = vsel %vm53_vm5, %v93_v36, 0.0  ;;  %v108_v40 = vsel %vm53_vm5, %v94_v37, 0.0  ;;  %v1200_v29 = vld [vmem:[%s2455_s0 + $0x24] sm:$0x3] }
 0x429   :  { %100 = vadd.xlane.f32.xlu1 %v99_v32  ;;  %103 = vadd.xlane.f32.xlu0 %v102_v34  ;;  %v111_v22 = vsel %vm53_vm5, %v95_v58, 0.0  ;;  %v114_v28 = vsel %vm53_vm5, %v96_v9, 0.0  ;;  %v117_v27 = vsel %vm53_vm5, %v97_v31, 0.0  ;;  %v120_v33 = vsel %vm53_vm5, %v98_v39, 0.0  ;;  %v206_v44 = vpop.permute.xlu0 %205  ;;  %v1213_v30 = vld [vmem:[%s2455_s0 + $0x3c] sm:$0x3] }
 0x42a   :  { %v208_v61 = vmul.f32 %v1207_v52, %v206_v44  ;;  %v209_v8 = vmul.f32 %v1208_v62, %v206_v44  ;;  %v210_v46 = vmul.f32 %v1209_v17, %v206_v44  ;;  %v211_v57 = vmul.f32 %v1210_v54, %v206_v44  ;;  %v1205_v37 = vld [vmem:[%s2455_s0 + $0x2e] sm:$0x3] }
 0x42b   :  { %v212_v3 = vmul.f32 %v1211_v63, %v206_v44  ;;  %v186_v14 = vsel %vm53_vm5, %v168_v5, 0.0  ;;  %v169_v21 = vmul.f32 %v2186_v42, %v1204_v16  ;;  %v165_v34 = vmul.f32 %v2186_v42, %v1200_v29 }
 0x42c   :  { %v216_v7 = vsel %vm53_vm5, %v208_v61, 0.0  ;;  %v219_v45 = vsel %vm53_vm5, %v209_v8, 0.0  ;;  %v222_v50 = vsel %vm53_vm5, %v210_v46, 0.0  ;;  %v225_v60 = vsel %vm53_vm5, %v211_v57, 0.0 }
 0x42d   :  { %106 = vadd.xlane.f32.xlu1 %v105_v15  ;;  %109 = vadd.xlane.f32.xlu0 %v108_v40  ;;  %v228_v6 = vsel %vm53_vm5, %v212_v3, 0.0  ;;  %v189_v32 = vsel %vm53_vm5, %v169_v21, 0.0  ;;  %v214_v36 = vmul.f32 %v1213_v30, %v206_v44  ;;  %v177_v2 = vsel %vm53_vm5, %v165_v34, 0.0 }
 0x42e   :  { %v170_v15 = vmul.f32 %v2186_v42, %v1205_v37  ;;  %v215_v58 = vmul.f32 %v1214_v38, %v206_v44 }
 0x42f   :  { %v234_v40 = vsel %vm53_vm5, %v214_v36, 0.0 }
 0x430   :  { %v192_v9 = vsel %vm53_vm5, %v170_v15, 0.0  ;;  %v237_v4 = vsel %vm53_vm5, %v215_v58, 0.0  ;;  %v700_v15 = vmul.f32 4.0, %v2153_v49 }
 0x431   :  { %112 = vadd.xlane.f32.xlu1 %v111_v22  ;;  %115 = vadd.xlane.f32.xlu0 %v114_v28 }
 0x435   :  { %118 = vadd.xlane.f32.xlu1 %v117_v27  ;;  %121 = vadd.xlane.f32.xlu0 %v120_v33 }
 0x439   :  { %172 = vadd.xlane.f32.xlu0 %v171_v35 }
 0x43d   :  { %175 = vadd.xlane.f32.xlu0 %v174_v53 }
 0x441   :  { %217 = vadd.xlane.f32.xlu0 %v216_v7 }
 0x445   :  { %220 = vadd.xlane.f32.xlu0 %v219_v45 }
 0x446   :  { %138 = vperm.xlu1 %1587, %v1197_v47  }
 0x449   :  { %223 = vadd.xlane.f32.xlu0 %v222_v50 }
 0x44a   :  { %1588 = vset.pattern.permute.xlu1 %v1601_v10  ;;  %v1212_v10 = vld [vmem:[%s2455_s0 + $0x3a] sm:$0x3] }
 0x44b   :  { %v213_v19 = vmul.f32 %v1212_v10, %v206_v44 }
 0x44d   :  { %181 = vadd.xlane.f32.xlu0 %v180_v55  ;;  %v231_v23 = vsel %vm53_vm5, %v213_v19, 0.0 }
 0x451   :  { %226 = vadd.xlane.f32.xlu0 %v225_v60 }
 0x455   :  { %184 = vadd.xlane.f32.xlu0 %v183_v0 }
 0x456   :  { %v68_v12 = vpop.xlane.xlu1 %67 }
 0x459   :  { %229 = vadd.xlane.f32.xlu0 %v228_v6 }
 0x45a   :  { %v71_v18 = vpop.xlane.xlu0 %70  ;;  %v74_v22 = vpop.xlane.xlu1 %73 }
 0x45d   :  { %187 = vadd.xlane.f32.xlu0 %v186_v14 }
 0x45e   :  { %v77_v28 = vpop.xlane.xlu0 %76 }
 0x461   :  { %232 = vadd.xlane.f32.xlu0 %v231_v23 }
 0x465   :  { %190 = vadd.xlane.f32.xlu0 %v189_v32 }
 0x469   :  { %235 = vadd.xlane.f32.xlu0 %v234_v40 }
 0x46a   :  { %178 = vadd.xlane.f32.xlu1 %v177_v2 }
 0x46d   :  { %238 = vadd.xlane.f32.xlu0 %v237_v4 }
 0x46e   :  { %193 = vadd.xlane.f32.xlu1 %v192_v9  ;;  %v701_v9 = vmul.f32 0.5, %v700_v15 }
 0x470   :  { %1590 = vtanh.f32 %v701_v9 }
 0x47f   :  { %249 = vperm.xlu1 %1588, %v1197_v47  }
 0x4b6   :  { %v101_v31 = vpop.xlane.xlu1 %100  ;;  %v104_v39 = vpop.xlane.xlu0 %103 }
 0x4b7   :  { %v124_v53 = vadd.f32 %v104_v39, %v2209_v11  ;;  %v123_v62 = vadd.f32 %v101_v31, %v2223_v25  ;;  %v1591_v31 = vpop.eup %1590 }
 0x4b9   :  { %v1099_v41 = vpop.f32.mrb[4].mxu1 }
 0x4ba   :  { %v2326_v42 = vadd.f32 %v2150_v26, %v1099_v41  ;;  %v1394_v24 = vpop.f32.mrb[5].mxu1  ;;  %v107_v27 = vpop.xlane.xlu1 %106 }
 0x4bb   :  { %v110_v33 = vpop.xlane.xlu0 %109  ;;  %v125_v61 = vadd.f32 %v107_v27, %v2233_v13 }
 0x4bc   :  { %1239 = vst.msk [vmem:[%s2460_s8 + $0x8] sm:$0xff] %vm698_vm8, %v2326_v42  ;;  %v126_v26 = vadd.f32 %v110_v33, %v2248_v20  ;;  %v1105_v40 = vmul.f32 4.0, %v2326_v42  ;;  %v703_v33 = vadd.f32 1.0, %v1591_v31 }
 0x4be   :  { %v113_v35 = vpop.xlane.xlu1 %112  ;;  %v1106_v4 = vmul.f32 0.5, %v1105_v40 }
 0x4bf   :  { %v116_v43 = vpop.xlane.xlu0 %115  ;;  %v127_v7 = vadd.f32 %v113_v35, %v68_v12 }
 0x4c0   :  { %v128_v46 = vadd.f32 %v116_v43, %v71_v18  ;;  %1592 = vtanh.f32 %v1106_v4 }
 0x4c2   :  { %v119_v44 = vpop.xlane.xlu1 %118 }
 0x4c3   :  { %v122_v52 = vpop.xlane.xlu0 %121  ;;  %v129_v51 = vadd.f32 %v119_v44, %v74_v22  ;;  %v704_v44 = vmul.f32 0.5, %v703_v33 }
 0x4c4   :  { %v130_v8 = vadd.f32 %v122_v52, %v77_v28 }
 0x4c6   :  { %v139_v17 = vpop.permute.xlu1 %138 }
 0x4c7   :  { %v2337_v45 = vpop.xlane.xlu0 %172  ;;  %v142_v47 = vadd.f32 %v139_v17, %v124_v53  ;;  %v2339_v48 = vadd.f32 %v139_v17, %v125_v61  ;;  %v2341_v50 = vadd.f32 %v139_v17, %v126_v26  ;;  %v2343_v11 = vadd.f32 %v139_v17, %v127_v7 }
 0x4c8   :  { %v2345_v13 = vadd.f32 %v139_v17, %v130_v8  ;;  %v141_v20 = vadd.f32 %v139_v17, %v123_v62  ;;  %v2347_v25 = vadd.f32 %v139_v17, %v128_v46  ;;  %v2350_v56 = vadd.f32 %v139_v17, %v129_v51 }
 0x4c9   :  { %v714_v54 = vrot.slane %v142_v47, 7  ;;  %v717_v55 = vrot.slane %v2339_v48, 6  ;;  %v720_v59 = vrot.slane %v2341_v50, 5  ;;  %v723_v0 = vrot.slane %v2343_v11, 4 }
 0x4ca   :  { %v732_v60 = vrot.slane %v2345_v13, 1  ;;  %v726_v3 = vrot.slane %v2347_v25, 3  ;;  %v729_v10 = vrot.slane %v2350_v56, 2  ;;  %v1136_v28 = vrot.slane %v141_v20, 1  ;;  %v1593_v39 = vpop.eup %1592 }
 0x4cb   :  { %v2352_v57 = vpop.xlane.xlu0 %175  ;;  %v1111_v63 = vsel %vm718_vm9, %v714_v54, %v141_v20  ;;  %v716_v6 = vsel %vm715_vm12, %v714_v54, %v141_v20  ;;  %v1138_v41 = vrot.slane %v2339_v48, 7  ;;  %v1108_v49 = vadd.f32 1.0, %v1593_v39 }
 0x4cc   :  { %v1112_v1 = vsel %vm721_vm10, %v717_v55, %v1111_v63  ;;  %1241 = vst.msk [vmem:[%s2463_s7 + $0xf] sm:$0x1] %vm1122_vm13, %v732_v60  ;;  %v719_v19 = vsel %vm718_vm9, %v717_v55, %v716_v6  ;;  %v1137_v27 = vsel %vm715_vm12, %v142_v47, %v1136_v28  ;;  %v1140_v43 = vrot.slane %v2341_v50, 6 }
 0x4cd   :  { %v1113_v5 = vsel %vm724_vm11, %v720_v59, %v1112_v1  ;;  %v722_v23 = vsel %vm721_vm10, %v720_v59, %v719_v19  ;;  %v1139_v42 = vsel %vm718_vm9, %v1138_v41, %v1137_v27  ;;  %v2393_v52 = vmul.f32 0.5, %v1108_v49 }
 0x4ce   :  { %v1114_v14 = vsel %vm727_vm14, %v723_v0, %v1113_v5  ;;  %v725_v30 = vsel %vm724_vm11, %v723_v0, %v722_v23  ;;  %v1141_v53 = vsel %vm721_vm10, %v1140_v43, %v1139_v42  ;;  %v1142_v61 = vrot.slane %v2343_v11, 5 }
 0x4cf   :  { %v218_v16 = vpop.xlane.xlu0 %217  ;;  %v1115_v21 = vsel %vm730_vm15, %v726_v3, %v1114_v14  ;;  %v728_v32 = vsel %vm727_vm14, %v726_v3, %v725_v30  ;;  %v1567_v7 = vround.rtne.f32 %v704_v44  ;;  %v1568_v17 = vround.rtne.f32 %v2393_v52 }
 0x4d0   :  { %v1116_v29 = vsel %vm733_vm0, %v729_v10, %v1115_v21  ;;  %v731_v36 = vsel %vm730_vm15, %v729_v10, %v728_v32  ;;  %v1143_v8 = vsel %vm724_vm11, %v1142_v61, %v1141_v53  ;;  %v1144_v46 = vrot.slane %v2347_v25, 4 }
 0x4d1   :  { %1240 = vst.msk [vmem:[%s2463_s7 + $0x7] sm:$0xfe] %vm1120_vm1, %v1116_v29  ;;  %v2380_v37 = vsel %vm733_vm0, %v732_v60, %v731_v36  ;;  %v2401_v50 = vmul.f32 %v1567_v7, %v704_v44  ;;  %v1146_v51 = vrot.slane %v2350_v56, 3  ;;  %v763_v54 = vsub.f32 1.0, %v1567_v7 }
 0x4d2   :  { %736 = vst.msk [vmem:[%s2463_s7] sm:$0xff] %vm698_vm8, %v2380_v37  ;;  %v1145_v48 = vsel %vm727_vm14, %v1144_v46, %v1143_v8  ;;  %v2405_v11 = vmul.f32 %v1568_v17, %v2393_v52  ;;  %v1148_v55 = vrot.slane %v2345_v13, 2  ;;  %v240_v59 = vadd.f32 %v218_v16, %v2337_v45 }
 0x4d3   :  { %v221_v34 = vpop.xlane.xlu0 %220  ;;  %v1147_v0 = vsel %vm730_vm15, %v1146_v51, %v1145_v48  ;;  %v762_v46 = vmul.f32 %v2401_v50, %v2380_v37 }
 0x4d4   :  { %v241_v60 = vadd.f32 %v221_v34, %v2352_v57  ;;  %v1149_v57 = vsel %vm733_vm0, %v1148_v55, %v1147_v0 }
 0x4d5   :  { %v1151_v48 = vmul.f32 %v1149_v57, %v2405_v11 }
 0x4d7   :  { %v224_v38 = vpop.xlane.xlu0 %223 }
 0x4db   :  { %v182_v2 = vpop.xlane.xlu0 %181 }
 0x4df   :  { %v227_v58 = vpop.xlane.xlu0 %226 }
 0x4e0   :  { %v243_v63 = vadd.f32 %v227_v58, %v182_v2 }
 0x4e3   :  { %v185_v12 = vpop.xlane.xlu0 %184 }
 0x4e7   :  { %v230_v18 = vpop.xlane.xlu0 %229 }
 0x4e8   :  { %v244_v1 = vadd.f32 %v230_v18, %v185_v12 }
 0x4eb   :  { %v188_v22 = vpop.xlane.xlu0 %187 }
 0x4ef   :  { %v233_v24 = vpop.xlane.xlu0 %232 }
 0x4f0   :  { %v245_v3 = vadd.f32 %v233_v24, %v188_v22 }
 0x4f3   :  { %v191_v35 = vpop.xlane.xlu0 %190 }
 0x4f7   :  { %v236_v26 = vpop.xlane.xlu0 %235  ;;  %v179_v62 = vpop.xlane.xlu1 %178 }
 0x4f8   :  { %v242_v25 = vadd.f32 %v224_v38, %v179_v62  ;;  %v246_v5 = vadd.f32 %v236_v26, %v191_v35  ;;  %v1152_v62 = vsub.f32 1.0, %v1568_v17 }
 0x4fb   :  { %v194_v47 = vpop.xlane.xlu1 %193  ;;  %v239_v20 = vpop.xlane.xlu0 %238 }
 0x4fc   :  { %v247_v6 = vadd.f32 %v239_v20, %v194_v47 }
 0x4ff   :  { %v250_v56 = vpop.permute.xlu1 %249 }
 0x500   :  { %v252_v10 = vadd.f32 %v250_v56, %v240_v59  ;;  %v253_v14 = vadd.f32 %v250_v56, %v241_v60  ;;  %v254_v19 = vadd.f32 %v250_v56, %v242_v25  ;;  %v255_v21 = vadd.f32 %v250_v56, %v243_v63 }
 0x501   :  { %v256_v23 = vadd.f32 %v250_v56, %v244_v1  ;;  %v257_v29 = vadd.f32 %v250_v56, %v245_v3  ;;  %v258_v13 = vadd.f32 %v250_v56, %v246_v5  ;;  %v259_v30 = vadd.f32 %v250_v56, %v247_v6 }
 0x502   :  { %v745_v45 = vrot.slane %v253_v14, 7  ;;  %v747_v16 = vrot.slane %v254_v19, 6  ;;  %v1153_v32 = vrot.slane %v252_v10, 1  ;;  %v749_v34 = vrot.slane %v255_v21, 5 }
 0x503   :  { %v751_v36 = vrot.slane %v256_v23, 4  ;;  %v753_v38 = vrot.slane %v257_v29, 3  ;;  %v757_v2 = vrot.slane %v259_v30, 1  ;;  %v1155_v9 = vrot.slane %v254_v19, 7 }
 0x504   :  { %v746_v15 = vsel %vm715_vm12, %v745_v45, %v252_v10  ;;  %v1124_v40 = vsel %vm718_vm9, %v745_v45, %v252_v10  ;;  %v1154_v58 = vsel %vm715_vm12, %v253_v14, %v1153_v32  ;;  %v755_v12 = vrot.slane %v258_v13, 2 }
 0x505   :  { %v748_v4 = vsel %vm718_vm9, %v747_v16, %v746_v15  ;;  %v1125_v18 = vsel %vm721_vm10, %v747_v16, %v1124_v40  ;;  %1243 = vst.msk [vmem:[%s2464_s9 + $0xf] sm:$0x1] %vm1122_vm13, %v757_v2  ;;  %v1157_v22 = vrot.slane %v255_v21, 6  ;;  %v1156_v39 = vsel %vm718_vm9, %v1155_v9, %v1154_v58 }
 0x506   :  { %v750_v28 = vsel %vm721_vm10, %v749_v34, %v748_v4  ;;  %v1126_v31 = vsel %vm724_vm11, %v749_v34, %v1125_v18  ;;  %v1159_v41 = vrot.slane %v256_v23, 5  ;;  %v1161_v49 = vrot.slane %v257_v29, 4 }
 0x507   :  { %v752_v24 = vsel %vm724_vm11, %v751_v36, %v750_v28  ;;  %v1127_v27 = vsel %vm727_vm14, %v751_v36, %v1126_v31  ;;  %v1158_v33 = vsel %vm721_vm10, %v1157_v22, %v1156_v39  ;;  %v1163_v44 = vrot.slane %v258_v13, 3 }
 0x508   :  { %v754_v35 = vsel %vm727_vm14, %v753_v38, %v752_v24  ;;  %v1128_v42 = vsel %vm730_vm15, %v753_v38, %v1127_v27  ;;  %v1160_v43 = vsel %vm724_vm11, %v1159_v41, %v1158_v33  ;;  %v1165_v26 = vrot.slane %v259_v30, 2 }
 0x509   :  { %v756_v52 = vsel %vm730_vm15, %v755_v12, %v754_v35  ;;  %v1129_v53 = vsel %vm733_vm0, %v755_v12, %v1128_v42  ;;  %v1162_v61 = vsel %vm727_vm14, %v1161_v49, %v1160_v43 }
 0x50a   :  { %v758_v7 = vsel %vm733_vm0, %v757_v2, %v756_v52  ;;  %1242 = vst.msk [vmem:[%s2464_s9 + $0x7] sm:$0xfe] %vm1120_vm1, %v1129_v53  ;;  %v1164_v8 = vsel %vm730_vm15, %v1163_v44, %v1162_v61 }
 0x50b   :  { %760 = vst.msk [vmem:[%s2464_s9] sm:$0xff] %vm698_vm8, %v758_v7  ;;  %v764_v47 = vmul.f32 %v763_v54, %v758_v7  ;;  %v1166_v17 = vsel %vm733_vm0, %v1165_v26, %v1164_v8 }
 0x50c   :  { %v1168_v51 = vmul.f32 %v1166_v17, %v1152_v62 }
 0x50d   :  { %v765_v20 = vadd.f32 %v764_v47, %v762_v46 }
 0x50e   :  { %v1169_v55 = vadd.f32 %v1168_v51, %v1151_v48 }
 0x50f   :  { %766 = vst.msk [vmem:[%s2465_s10] sm:$0xff] %vm698_vm8, %v765_v20 }
 0x510   :  { %1244 = vst.msk [vmem:[%s2465_s10 + $0x8] sm:$0xff] %vm698_vm8, %v1169_v55 }

</bundles_post_ra>
